<compile_context>
chip_gen: v6e
topology: v6e:2x2x1
jax: 0.10.0
libtpu: 0.0.40
codegen_flags: <defaults>
</compile_context>

<pallas_src>
import jax
import jax.numpy as jnp
from jax.experimental import pallas as pl
from jax.experimental.pallas import tpu as pltpu

LANE = 128
SUBLANE = 8


def _round_up(n, m):
    return ((n + m - 1) // m) * m


def nbeats_kernel(x_ref,
                  w1_ref, b1_ref,
                  w2_ref, b2_ref,
                  w3_ref, b3_ref,
                  w4_ref, b4_ref,
                  wh_ref, bh_ref,
                  out_ref):
    # All matmuls accumulate in f32 on the MXU; biases stay f32; ReLU runs on
    # the f32 accumulator; activations are cast back to the weight dtype only
    # when a bf16 weight path is requested.
    x = x_ref[...]

    h = jnp.dot(x, w1_ref[...], preferred_element_type=jnp.float32) + b1_ref[...]
    h = jnp.maximum(h, 0.0).astype(w2_ref.dtype)

    h = jnp.dot(h, w2_ref[...], preferred_element_type=jnp.float32) + b2_ref[...]
    h = jnp.maximum(h, 0.0).astype(w3_ref.dtype)

    h = jnp.dot(h, w3_ref[...], preferred_element_type=jnp.float32) + b3_ref[...]
    h = jnp.maximum(h, 0.0).astype(w4_ref.dtype)

    h = jnp.dot(h, w4_ref[...], preferred_element_type=jnp.float32) + b4_ref[...]
    h = jnp.maximum(h, 0.0).astype(wh_ref.dtype)

    forecast = (jnp.dot(h, wh_ref[...], preferred_element_type=jnp.float32)
                + bh_ref[...])
    out_ref[...] = forecast.astype(out_ref.dtype)


def _pick_batch_tile(B, footprint_fn, budget):
    # Candidates: multiples of 8 that divide B, fit the VMEM budget and give a
    # grid of >= 2 steps (needed for DMA/compute overlap and v7x megacore).
    candidates = [t for t in range(SUBLANE, B, SUBLANE)
                  if B % t == 0 and footprint_fn(t) <= budget]
    if not candidates:
        return B  # tiny batch: single grid step, whole batch in one tile
    even_grid = [t for t in candidates if (B // t) % 2 == 0]
    pool = even_grid if even_grid else candidates
    return max(pool)


def nbeats_forward(x, params, *, batch_tile=None, weights_dtype=None,
                   vmem_budget_bytes=24 << 20):
    """x: [B, backcast_length] -> forecast: [B, forecast_length]."""
    B, backcast = x.shape
    w1, b1, w2, b2, w3, b3, w4, b4, wh, bh = params
    hidden = w1.shape[1]
    forecast_len = wh.shape[1]
    out_dtype = x.dtype  # output dtype follows the (pre-cast) input dtype

    # --- lane-pad the forecast head so output stores are 128-lane dense ----
    out_pad = _round_up(max(forecast_len, LANE), LANE)
    if out_pad != forecast_len:
        wh_p = jnp.pad(wh, ((0, 0), (0, out_pad - forecast_len)))
        bh_p = jnp.pad(bh, ((0, 0), (0, out_pad - forecast_len)))
    else:
        wh_p, bh_p = wh, bh

    # --- optional bf16 inputs/weights (v6e/v7x); accumulation stays f32 -----
    if weights_dtype is not None:
        x = x.astype(weights_dtype)
        w1, w2, w3, w4, wh_p = (w.astype(weights_dtype)
                                for w in (w1, w2, w3, w4, wh_p))

    weight_list = [w1, b1, w2, b2, w3, b3, w4, b4, wh_p, bh_p]

    # --- batch tile selection against a VMEM budget -------------------------
    itemsize_x = x.dtype.itemsize
    hidden_pad = _round_up(hidden, LANE)
    backcast_pad = _round_up(backcast, LANE)
    weight_bytes = sum(
        _round_up(a.shape[0], SUBLANE) * _round_up(a.shape[1], LANE)
        * a.dtype.itemsize for a in weight_list)

    def tile_footprint(bt):
        x_buf = 2 * bt * backcast_pad * itemsize_x              # x double buffer
        out_buf = 2 * bt * out_pad * jnp.dtype(out_dtype).itemsize
        inter = 6 * bt * max(hidden_pad, out_pad) * 4           # f32 intermediates
        return x_buf + out_buf + inter + weight_bytes

    if batch_tile is None:
        batch_tile = _pick_batch_tile(B, tile_footprint, vmem_budget_bytes)
    assert B % batch_tile == 0
    assert batch_tile == B or batch_tile % SUBLANE == 0
    grid = (B // batch_tile,)

    # Explicit scoped-VMEM limit sized from the actual footprint; capped at
    # 64 MiB so it is safe on v7x (smaller physical VMEM than v5e/v6e).
    vmem_limit = int(min(max(int(tile_footprint(batch_tile) * 1.5), 32 << 20),
                         64 << 20))

    # Advisory cost estimate for XLA's scheduler.
    flops = 2 * B * (backcast * hidden + 3 * hidden * hidden + hidden * out_pad)
    bytes_accessed = int(x.size * x.dtype.itemsize
                         + sum(a.size * a.dtype.itemsize for a in weight_list)
                         + B * out_pad * jnp.dtype(out_dtype).itemsize)
    cost = pl.CostEstimate(flops=flops, transcendentals=0,
                           bytes_accessed=bytes_accessed)

    def weight_spec(shape, single_buffer):
        ndim = len(shape)
        index_map = lambda i: (0,) * ndim  # grid-invariant
        if single_buffer:
            # Constant across the grid -> no need for double buffering.
            return pl.BlockSpec(shape, index_map, pipeline_mode=pl.Buffered(1))
        return pl.BlockSpec(shape, index_map)

    def build(single_buffer_weights):
        in_specs = [pl.BlockSpec((batch_tile, backcast), lambda i: (i, 0))]
        in_specs += [weight_spec(a.shape, single_buffer_weights)
                     for a in weight_list]
        out_spec = pl.BlockSpec((batch_tile, out_pad), lambda i: (i, 0))
        return pl.pallas_call(
            nbeats_kernel,
            out_shape=jax.ShapeDtypeStruct((B, out_pad), out_dtype),
            grid_spec=pltpu.PrefetchScalarGridSpec(
                num_scalar_prefetch=0,
                grid=grid,
                in_specs=in_specs,
                out_specs=out_spec,
            ),
            compiler_params=pltpu.CompilerParams(
                dimension_semantics=("parallel",),
                vmem_limit_bytes=vmem_limit),
            cost_estimate=cost,
        )

    try:
        out = build(single_buffer_weights=True)(x, *weight_list)
    except Exception:
        # Fallback if single-buffered (pl.Buffered(1)) weight specs are not
        # supported by this jax version; semantics are identical.
        out = build(single_buffer_weights=False)(x, *weight_list)

    return out[:, :forecast_len]


def init_nbeats_params(key, backcast_length, forecast_length, hidden_units):
    """Deterministic PyTorch-style (uniform +-1/sqrt(fan_in)) init.

    Weights are stored transposed relative to nn.Linear: [in, out].
    """
    dims = [
        (backcast_length, hidden_units),   # fc1
        (hidden_units, hidden_units),      # fc2
        (hidden_units, hidden_units),      # fc3
        (hidden_units, hidden_units),      # fc4
        (hidden_units, forecast_length),   # forecast_head
    ]
    params = []
    for (fan_in, fan_out) in dims:
        key, kw, kb = jax.random.split(key, 3)
        bound = 1.0 / jnp.sqrt(float(fan_in))
        w = jax.random.uniform(kw, (fan_in, fan_out), jnp.float32, -bound, bound)
        b = jax.random.uniform(kb, (1, fan_out), jnp.float32, -bound, bound)
        params.extend([w, b])
    return tuple(params)


def nbeats_reference(x, params):
    w1, b1, w2, b2, w3, b3, w4, b4, wh, bh = params
    h = jax.nn.relu(x @ w1 + b1)
    h = jax.nn.relu(h @ w2 + b2)
    h = jax.nn.relu(h @ w3 + b3)
    h = jax.nn.relu(h @ w4 + b4)
    return h @ wh + bh


if __name__ == "__main__":
    backcast_length = 16
    forecast_length = 8
    hidden_units = 32
    batch = 64  # multiple of 8 so the batch grid has >= 2 (even) steps

    key = jax.random.PRNGKey(0)
    kx, kp = jax.random.split(key)
    x = jax.random.normal(kx, (batch, backcast_length), jnp.float32)
    params = init_nbeats_params(kp, backcast_length, forecast_length,
                                hidden_units)

    out = nbeats_forward(x, params)
    out = jax.block_until_ready(out)

    ref = nbeats_reference(x, params)
    assert out.shape == (batch, forecast_length)
    assert jnp.allclose(out, ref, atol=1e-4, rtol=1e-4)

    print("KERNEL_OK")
</pallas_src>

<mosaic_0001>
module attributes {stable_mosaic.version = 11 : i64} {
  func.func @nbeats_kernel(%arg0: i32, %arg1: memref<32x16xf32, #tpu.memory_space<vmem>>, %arg2: memref<16x32xf32, #tpu.memory_space<vmem>>, %arg3: memref<1x32xf32, #tpu.memory_space<vmem>>, %arg4: memref<32x32xf32, #tpu.memory_space<vmem>>, %arg5: memref<1x32xf32, #tpu.memory_space<vmem>>, %arg6: memref<32x32xf32, #tpu.memory_space<vmem>>, %arg7: memref<1x32xf32, #tpu.memory_space<vmem>>, %arg8: memref<32x32xf32, #tpu.memory_space<vmem>>, %arg9: memref<1x32xf32, #tpu.memory_space<vmem>>, %arg10: memref<32x128xf32, #tpu.memory_space<vmem>>, %arg11: memref<1x128xf32, #tpu.memory_space<vmem>>, %arg12: memref<32x128xf32, #tpu.memory_space<vmem>>) attributes {dimension_semantics = [#tpu.dimension_semantics<parallel>], iteration_bounds = array<i64: 2>, scalar_prefetch = 0 : i64, scratch_operands = 0 : i64, tpu.core_type = #tpu.core_type<tc>, window_params = [{transform_indices = @transform_0, window_bounds = array<i64: 32, 16>}, {pipeline_mode = #tpu.pipeline_mode<synchronous>, transform_indices = @transform_1, window_bounds = array<i64: 16, 32>}, {pipeline_mode = #tpu.pipeline_mode<synchronous>, transform_indices = @transform_2, window_bounds = array<i64: 1, 32>}, {pipeline_mode = #tpu.pipeline_mode<synchronous>, transform_indices = @transform_3, window_bounds = array<i64: 32, 32>}, {pipeline_mode = #tpu.pipeline_mode<synchronous>, transform_indices = @transform_4, window_bounds = array<i64: 1, 32>}, {pipeline_mode = #tpu.pipeline_mode<synchronous>, transform_indices = @transform_5, window_bounds = array<i64: 32, 32>}, {pipeline_mode = #tpu.pipeline_mode<synchronous>, transform_indices = @transform_6, window_bounds = array<i64: 1, 32>}, {pipeline_mode = #tpu.pipeline_mode<synchronous>, transform_indices = @transform_7, window_bounds = array<i64: 32, 32>}, {pipeline_mode = #tpu.pipeline_mode<synchronous>, transform_indices = @transform_8, window_bounds = array<i64: 1, 32>}, {pipeline_mode = #tpu.pipeline_mode<synchronous>, transform_indices = @transform_9, window_bounds = array<i64: 32, 128>}, {pipeline_mode = #tpu.pipeline_mode<synchronous>, transform_indices = @transform_10, window_bounds = array<i64: 1, 128>}, {transform_indices = @transform_11, window_bounds = array<i64: 32, 128>}]} {
    %c0 = arith.constant 0 : index
    %c0_0 = arith.constant 0 : index
    %0 = vector.load %arg1[%c0, %c0_0] : memref<32x16xf32, #tpu.memory_space<vmem>>, vector<32x16xf32>
    %c0_1 = arith.constant 0 : index
    %c0_2 = arith.constant 0 : index
    %1 = vector.load %arg2[%c0_1, %c0_2] : memref<16x32xf32, #tpu.memory_space<vmem>>, vector<16x32xf32>
    %cst = arith.constant dense<0.000000e+00> : vector<32x32xf32>
    %2 = tpu.matmul %0, %1, %cst {dimension_numbers = #tpu.dot_dimension_numbers<[1], [0], [0], [1], [0, 0, 1, 1], [], []>} : vector<32x16xf32>, vector<16x32xf32>, vector<32x32xf32> -> vector<32x32xf32>
    %c0_3 = arith.constant 0 : index
    %c0_4 = arith.constant 0 : index
    %3 = vector.load %arg3[%c0_3, %c0_4] : memref<1x32xf32, #tpu.memory_space<vmem>>, vector<1x32xf32>
    %4 = vector.broadcast %3 : vector<1x32xf32> to vector<32x32xf32>
    %5 = arith.addf %2, %4 : vector<32x32xf32>
    %cst_5 = arith.constant 0.000000e+00 : f32
    %6 = vector.broadcast %cst_5 : f32 to vector<32x32xf32>
    %7 = arith.maximumf %5, %6 : vector<32x32xf32>
    %c0_6 = arith.constant 0 : index
    %c0_7 = arith.constant 0 : index
    %8 = vector.load %arg4[%c0_6, %c0_7] : memref<32x32xf32, #tpu.memory_space<vmem>>, vector<32x32xf32>
    %cst_8 = arith.constant dense<0.000000e+00> : vector<32x32xf32>
    %9 = tpu.matmul %7, %8, %cst_8 {dimension_numbers = #tpu.dot_dimension_numbers<[1], [0], [0], [1], [0, 0, 1, 1], [], []>} : vector<32x32xf32>, vector<32x32xf32>, vector<32x32xf32> -> vector<32x32xf32>
    %c0_9 = arith.constant 0 : index
    %c0_10 = arith.constant 0 : index
    %10 = vector.load %arg5[%c0_9, %c0_10] : memref<1x32xf32, #tpu.memory_space<vmem>>, vector<1x32xf32>
    %11 = vector.broadcast %10 : vector<1x32xf32> to vector<32x32xf32>
    %12 = arith.addf %9, %11 : vector<32x32xf32>
    %cst_11 = arith.constant 0.000000e+00 : f32
    %13 = vector.broadcast %cst_11 : f32 to vector<32x32xf32>
    %14 = arith.maximumf %12, %13 : vector<32x32xf32>
    %c0_12 = arith.constant 0 : index
    %c0_13 = arith.constant 0 : index
    %15 = vector.load %arg6[%c0_12, %c0_13] : memref<32x32xf32, #tpu.memory_space<vmem>>, vector<32x32xf32>
    %cst_14 = arith.constant dense<0.000000e+00> : vector<32x32xf32>
    %16 = tpu.matmul %14, %15, %cst_14 {dimension_numbers = #tpu.dot_dimension_numbers<[1], [0], [0], [1], [0, 0, 1, 1], [], []>} : vector<32x32xf32>, vector<32x32xf32>, vector<32x32xf32> -> vector<32x32xf32>
    %c0_15 = arith.constant 0 : index
    %c0_16 = arith.constant 0 : index
    %17 = vector.load %arg7[%c0_15, %c0_16] : memref<1x32xf32, #tpu.memory_space<vmem>>, vector<1x32xf32>
    %18 = vector.broadcast %17 : vector<1x32xf32> to vector<32x32xf32>
    %19 = arith.addf %16, %18 : vector<32x32xf32>
    %cst_17 = arith.constant 0.000000e+00 : f32
    %20 = vector.broadcast %cst_17 : f32 to vector<32x32xf32>
    %21 = arith.maximumf %19, %20 : vector<32x32xf32>
    %c0_18 = arith.constant 0 : index
    %c0_19 = arith.constant 0 : index
    %22 = vector.load %arg8[%c0_18, %c0_19] : memref<32x32xf32, #tpu.memory_space<vmem>>, vector<32x32xf32>
    %cst_20 = arith.constant dense<0.000000e+00> : vector<32x32xf32>
    %23 = tpu.matmul %21, %22, %cst_20 {dimension_numbers = #tpu.dot_dimension_numbers<[1], [0], [0], [1], [0, 0, 1, 1], [], []>} : vector<32x32xf32>, vector<32x32xf32>, vector<32x32xf32> -> vector<32x32xf32>
    %c0_21 = arith.constant 0 : index
    %c0_22 = arith.constant 0 : index
    %24 = vector.load %arg9[%c0_21, %c0_22] : memref<1x32xf32, #tpu.memory_space<vmem>>, vector<1x32xf32>
    %25 = vector.broadcast %24 : vector<1x32xf32> to vector<32x32xf32>
    %26 = arith.addf %23, %25 : vector<32x32xf32>
    %cst_23 = arith.constant 0.000000e+00 : f32
    %27 = vector.broadcast %cst_23 : f32 to vector<32x32xf32>
    %28 = arith.maximumf %26, %27 : vector<32x32xf32>
    %c0_24 = arith.constant 0 : index
    %c0_25 = arith.constant 0 : index
    %29 = vector.load %arg10[%c0_24, %c0_25] : memref<32x128xf32, #tpu.memory_space<vmem>>, vector<32x128xf32>
    %cst_26 = arith.constant dense<0.000000e+00> : vector<32x128xf32>
    %30 = tpu.matmul %28, %29, %cst_26 {dimension_numbers = #tpu.dot_dimension_numbers<[1], [0], [0], [1], [0, 0, 1, 1], [], []>} : vector<32x32xf32>, vector<32x128xf32>, vector<32x128xf32> -> vector<32x128xf32>
    %c0_27 = arith.constant 0 : index
    %c0_28 = arith.constant 0 : index
    %31 = vector.load %arg11[%c0_27, %c0_28] : memref<1x128xf32, #tpu.memory_space<vmem>>, vector<1x128xf32>
    %32 = vector.broadcast %31 : vector<1x128xf32> to vector<32x128xf32>
    %33 = arith.addf %30, %32 : vector<32x128xf32>
    %c0_29 = arith.constant 0 : index
    %c0_30 = arith.constant 0 : index
    %34 = vector.load %arg12[%c0_29, %c0_30] : memref<32x128xf32, #tpu.memory_space<vmem>>, vector<32x128xf32>
    tpu.vector_store %arg12[%c0_29, %c0_30], %33 {strides = array<i32>} : memref<32x128xf32, #tpu.memory_space<vmem>>, vector<32x128xf32>,
    return
  }
  func.func @transform_0(%arg0: i32) -> (i32, i32) {
    %c0_i32 = arith.constant 0 : i32
    %c0_i32_0 = arith.constant 0 : i32
    return %arg0, %c0_i32 : i32, i32
  }
  func.func @transform_1(%arg0: i32) -> (i32, i32) {
    %c0_i32 = arith.constant 0 : i32
    %c0_i32_0 = arith.constant 0 : i32
    %c0_i32_1 = arith.constant 0 : i32
    return %c0_i32, %c0_i32_0 : i32, i32
  }
  func.func @transform_2(%arg0: i32) -> (i32, i32) {
    %c0_i32 = arith.constant 0 : i32
    %c0_i32_0 = arith.constant 0 : i32
    %c0_i32_1 = arith.constant 0 : i32
    return %c0_i32, %c0_i32_0 : i32, i32
  }
  func.func @transform_3(%arg0: i32) -> (i32, i32) {
    %c0_i32 = arith.constant 0 : i32
    %c0_i32_0 = arith.constant 0 : i32
    %c0_i32_1 = arith.constant 0 : i32
    return %c0_i32, %c0_i32_0 : i32, i32
  }
  func.func @transform_4(%arg0: i32) -> (i32, i32) {
    %c0_i32 = arith.constant 0 : i32
    %c0_i32_0 = arith.constant 0 : i32
    %c0_i32_1 = arith.constant 0 : i32
    return %c0_i32, %c0_i32_0 : i32, i32
  }
  func.func @transform_5(%arg0: i32) -> (i32, i32) {
    %c0_i32 = arith.constant 0 : i32
    %c0_i32_0 = arith.constant 0 : i32
    %c0_i32_1 = arith.constant 0 : i32
    return %c0_i32, %c0_i32_0 : i32, i32
  }
  func.func @transform_6(%arg0: i32) -> (i32, i32) {
    %c0_i32 = arith.constant 0 : i32
    %c0_i32_0 = arith.constant 0 : i32
    %c0_i32_1 = arith.constant 0 : i32
    return %c0_i32, %c0_i32_0 : i32, i32
  }
  func.func @transform_7(%arg0: i32) -> (i32, i32) {
    %c0_i32 = arith.constant 0 : i32
    %c0_i32_0 = arith.constant 0 : i32
    %c0_i32_1 = arith.constant 0 : i32
    return %c0_i32, %c0_i32_0 : i32, i32
  }
  func.func @transform_8(%arg0: i32) -> (i32, i32) {
    %c0_i32 = arith.constant 0 : i32
    %c0_i32_0 = arith.constant 0 : i32
    %c0_i32_1 = arith.constant 0 : i32
    return %c0_i32, %c0_i32_0 : i32, i32
  }
  func.func @transform_9(%arg0: i32) -> (i32, i32) {
    %c0_i32 = arith.constant 0 : i32
    %c0_i32_0 = arith.constant 0 : i32
    %c0_i32_1 = arith.constant 0 : i32
    return %c0_i32, %c0_i32_0 : i32, i32
  }
  func.func @transform_10(%arg0: i32) -> (i32, i32) {
    %c0_i32 = arith.constant 0 : i32
    %c0_i32_0 = arith.constant 0 : i32
    %c0_i32_1 = arith.constant 0 : i32
    return %c0_i32, %c0_i32_0 : i32, i32
  }
  func.func @transform_11(%arg0: i32) -> (i32, i32) {
    %c0_i32 = arith.constant 0 : i32
    %c0_i32_0 = arith.constant 0 : i32
    return %arg0, %c0_i32 : i32, i32
  }
}

module attributes {stable_mosaic.version = 11 : i64} {
  func.func @nbeats_kernel(%arg0: i32, %arg1: memref<32x16xf32, #tpu.memory_space<vmem>>, %arg2: memref<16x32xf32, #tpu.memory_space<vmem>>, %arg3: memref<1x32xf32, #tpu.memory_space<vmem>>, %arg4: memref<32x32xf32, #tpu.memory_space<vmem>>, %arg5: memref<1x32xf32, #tpu.memory_space<vmem>>, %arg6: memref<32x32xf32, #tpu.memory_space<vmem>>, %arg7: memref<1x32xf32, #tpu.memory_space<vmem>>, %arg8: memref<32x32xf32, #tpu.memory_space<vmem>>, %arg9: memref<1x32xf32, #tpu.memory_space<vmem>>, %arg10: memref<32x128xf32, #tpu.memory_space<vmem>>, %arg11: memref<1x128xf32, #tpu.memory_space<vmem>>, %arg12: memref<32x128xf32, #tpu.memory_space<vmem>>) attributes {dimension_semantics = [#tpu.dimension_semantics<parallel>], iteration_bounds = array<i64: 2>, scalar_prefetch = 0 : i64, scratch_operands = 0 : i64, tpu.core_type = #tpu.core_type<tc>, window_params = [{transform_indices = @transform_0, window_bounds = array<i64: 32, 16>}, {pipeline_mode = #tpu.pipeline_mode<synchronous>, transform_indices = @transform_1, window_bounds = array<i64: 16, 32>}, {pipeline_mode = #tpu.pipeline_mode<synchronous>, transform_indices = @transform_2, window_bounds = array<i64: 1, 32>}, {pipeline_mode = #tpu.pipeline_mode<synchronous>, transform_indices = @transform_3, window_bounds = array<i64: 32, 32>}, {pipeline_mode = #tpu.pipeline_mode<synchronous>, transform_indices = @transform_4, window_bounds = array<i64: 1, 32>}, {pipeline_mode = #tpu.pipeline_mode<synchronous>, transform_indices = @transform_5, window_bounds = array<i64: 32, 32>}, {pipeline_mode = #tpu.pipeline_mode<synchronous>, transform_indices = @transform_6, window_bounds = array<i64: 1, 32>}, {pipeline_mode = #tpu.pipeline_mode<synchronous>, transform_indices = @transform_7, window_bounds = array<i64: 32, 32>}, {pipeline_mode = #tpu.pipeline_mode<synchronous>, transform_indices = @transform_8, window_bounds = array<i64: 1, 32>}, {pipeline_mode = #tpu.pipeline_mode<synchronous>, transform_indices = @transform_9, window_bounds = array<i64: 32, 128>}, {pipeline_mode = #tpu.pipeline_mode<synchronous>, transform_indices = @transform_10, window_bounds = array<i64: 1, 128>}, {transform_indices = @transform_11, window_bounds = array<i64: 32, 128>}]} {
    %c0 = arith.constant 0 : index
    %c0_0 = arith.constant 0 : index
    %0 = vector.load %arg1[%c0, %c0_0] : memref<32x16xf32, #tpu.memory_space<vmem>>, vector<32x16xf32>
    %c0_1 = arith.constant 0 : index
    %c0_2 = arith.constant 0 : index
    %1 = vector.load %arg2[%c0_1, %c0_2] : memref<16x32xf32, #tpu.memory_space<vmem>>, vector<16x32xf32>
    %cst = arith.constant dense<0.000000e+00> : vector<32x32xf32>
    %2 = tpu.matmul %0, %1, %cst {dimension_numbers = #tpu.dot_dimension_numbers<[1], [0], [0], [1], [0, 0, 1, 1], [], []>} : vector<32x16xf32>, vector<16x32xf32>, vector<32x32xf32> -> vector<32x32xf32>
    %c0_3 = arith.constant 0 : index
    %c0_4 = arith.constant 0 : index
    %3 = vector.load %arg3[%c0_3, %c0_4] : memref<1x32xf32, #tpu.memory_space<vmem>>, vector<1x32xf32>
    %4 = vector.broadcast %3 : vector<1x32xf32> to vector<32x32xf32>
    %5 = arith.addf %2, %4 : vector<32x32xf32>
    %cst_5 = arith.constant 0.000000e+00 : f32
    %6 = vector.broadcast %cst_5 : f32 to vector<32x32xf32>
    %7 = arith.maximumf %5, %6 : vector<32x32xf32>
    %c0_6 = arith.constant 0 : index
    %c0_7 = arith.constant 0 : index
    %8 = vector.load %arg4[%c0_6, %c0_7] : memref<32x32xf32, #tpu.memory_space<vmem>>, vector<32x32xf32>
    %cst_8 = arith.constant dense<0.000000e+00> : vector<32x32xf32>
    %9 = tpu.matmul %7, %8, %cst_8 {dimension_numbers = #tpu.dot_dimension_numbers<[1], [0], [0], [1], [0, 0, 1, 1], [], []>} : vector<32x32xf32>, vector<32x32xf32>, vector<32x32xf32> -> vector<32x32xf32>
    %c0_9 = arith.constant 0 : index
    %c0_10 = arith.constant 0 : index
    %10 = vector.load %arg5[%c0_9, %c0_10] : memref<1x32xf32, #tpu.memory_space<vmem>>, vector<1x32xf32>
    %11 = vector.broadcast %10 : vector<1x32xf32> to vector<32x32xf32>
    %12 = arith.addf %9, %11 : vector<32x32xf32>
    %cst_11 = arith.constant 0.000000e+00 : f32
    %13 = vector.broadcast %cst_11 : f32 to vector<32x32xf32>
    %14 = arith.maximumf %12, %13 : vector<32x32xf32>
    %c0_12 = arith.constant 0 : index
    %c0_13 = arith.constant 0 : index
    %15 = vector.load %arg6[%c0_12, %c0_13] : memref<32x32xf32, #tpu.memory_space<vmem>>, vector<32x32xf32>
    %cst_14 = arith.constant dense<0.000000e+00> : vector<32x32xf32>
    %16 = tpu.matmul %14, %15, %cst_14 {dimension_numbers = #tpu.dot_dimension_numbers<[1], [0], [0], [1], [0, 0, 1, 1], [], []>} : vector<32x32xf32>, vector<32x32xf32>, vector<32x32xf32> -> vector<32x32xf32>
    %c0_15 = arith.constant 0 : index
    %c0_16 = arith.constant 0 : index
    %17 = vector.load %arg7[%c0_15, %c0_16] : memref<1x32xf32, #tpu.memory_space<vmem>>, vector<1x32xf32>
    %18 = vector.broadcast %17 : vector<1x32xf32> to vector<32x32xf32>
    %19 = arith.addf %16, %18 : vector<32x32xf32>
    %cst_17 = arith.constant 0.000000e+00 : f32
    %20 = vector.broadcast %cst_17 : f32 to vector<32x32xf32>
    %21 = arith.maximumf %19, %20 : vector<32x32xf32>
    %c0_18 = arith.constant 0 : index
    %c0_19 = arith.constant 0 : index
    %22 = vector.load %arg8[%c0_18, %c0_19] : memref<32x32xf32, #tpu.memory_space<vmem>>, vector<32x32xf32>
    %cst_20 = arith.constant dense<0.000000e+00> : vector<32x32xf32>
    %23 = tpu.matmul %21, %22, %cst_20 {dimension_numbers = #tpu.dot_dimension_numbers<[1], [0], [0], [1], [0, 0, 1, 1], [], []>} : vector<32x32xf32>, vector<32x32xf32>, vector<32x32xf32> -> vector<32x32xf32>
    %c0_21 = arith.constant 0 : index
    %c0_22 = arith.constant 0 : index
    %24 = vector.load %arg9[%c0_21, %c0_22] : memref<1x32xf32, #tpu.memory_space<vmem>>, vector<1x32xf32>
    %25 = vector.broadcast %24 : vector<1x32xf32> to vector<32x32xf32>
    %26 = arith.addf %23, %25 : vector<32x32xf32>
    %cst_23 = arith.constant 0.000000e+00 : f32
    %27 = vector.broadcast %cst_23 : f32 to vector<32x32xf32>
    %28 = arith.maximumf %26, %27 : vector<32x32xf32>
    %c0_24 = arith.constant 0 : index
    %c0_25 = arith.constant 0 : index
    %29 = vector.load %arg10[%c0_24, %c0_25] : memref<32x128xf32, #tpu.memory_space<vmem>>, vector<32x128xf32>
    %cst_26 = arith.constant dense<0.000000e+00> : vector<32x128xf32>
    %30 = tpu.matmul %28, %29, %cst_26 {dimension_numbers = #tpu.dot_dimension_numbers<[1], [0], [0], [1], [0, 0, 1, 1], [], []>} : vector<32x32xf32>, vector<32x128xf32>, vector<32x128xf32> -> vector<32x128xf32>
    %c0_27 = arith.constant 0 : index
    %c0_28 = arith.constant 0 : index
    %31 = vector.load %arg11[%c0_27, %c0_28] : memref<1x128xf32, #tpu.memory_space<vmem>>, vector<1x128xf32>
    %32 = vector.broadcast %31 : vector<1x128xf32> to vector<32x128xf32>
    %33 = arith.addf %30, %32 : vector<32x128xf32>
    %c0_29 = arith.constant 0 : index
    %c0_30 = arith.constant 0 : index
    %34 = vector.load %arg12[%c0_29, %c0_30] : memref<32x128xf32, #tpu.memory_space<vmem>>, vector<32x128xf32>
    tpu.vector_store %arg12[%c0_29, %c0_30], %33 {strides = array<i32>} : memref<32x128xf32, #tpu.memory_space<vmem>>, vector<32x128xf32>,
    return
  }
  func.func @transform_0(%arg0: i32) -> (i32, i32) {
    %c0_i32 = arith.constant 0 : i32
    %c0_i32_0 = arith.constant 0 : i32
    return %arg0, %c0_i32 : i32, i32
  }
  func.func @transform_1(%arg0: i32) -> (i32, i32) {
    %c0_i32 = arith.constant 0 : i32
    %c0_i32_0 = arith.constant 0 : i32
    %c0_i32_1 = arith.constant 0 : i32
    return %c0_i32, %c0_i32_0 : i32, i32
  }
  func.func @transform_2(%arg0: i32) -> (i32, i32) {
    %c0_i32 = arith.constant 0 : i32
    %c0_i32_0 = arith.constant 0 : i32
    %c0_i32_1 = arith.constant 0 : i32
    return %c0_i32, %c0_i32_0 : i32, i32
  }
  func.func @transform_3(%arg0: i32) -> (i32, i32) {
    %c0_i32 = arith.constant 0 : i32
    %c0_i32_0 = arith.constant 0 : i32
    %c0_i32_1 = arith.constant 0 : i32
    return %c0_i32, %c0_i32_0 : i32, i32
  }
  func.func @transform_4(%arg0: i32) -> (i32, i32) {
    %c0_i32 = arith.constant 0 : i32
    %c0_i32_0 = arith.constant 0 : i32
    %c0_i32_1 = arith.constant 0 : i32
    return %c0_i32, %c0_i32_0 : i32, i32
  }
  func.func @transform_5(%arg0: i32) -> (i32, i32) {
    %c0_i32 = arith.constant 0 : i32
    %c0_i32_0 = arith.constant 0 : i32
    %c0_i32_1 = arith.constant 0 : i32
    return %c0_i32, %c0_i32_0 : i32, i32
  }
  func.func @transform_6(%arg0: i32) -> (i32, i32) {
    %c0_i32 = arith.constant 0 : i32
    %c0_i32_0 = arith.constant 0 : i32
    %c0_i32_1 = arith.constant 0 : i32
    return %c0_i32, %c0_i32_0 : i32, i32
  }
  func.func @transform_7(%arg0: i32) -> (i32, i32) {
    %c0_i32 = arith.constant 0 : i32
    %c0_i32_0 = arith.constant 0 : i32
    %c0_i32_1 = arith.constant 0 : i32
    return %c0_i32, %c0_i32_0 : i32, i32
  }
  func.func @transform_8(%arg0: i32) -> (i32, i32) {
    %c0_i32 = arith.constant 0 : i32
    %c0_i32_0 = arith.constant 0 : i32
    %c0_i32_1 = arith.constant 0 : i32
    return %c0_i32, %c0_i32_0 : i32, i32
  }
  func.func @transform_9(%arg0: i32) -> (i32, i32) {
    %c0_i32 = arith.constant 0 : i32
    %c0_i32_0 = arith.constant 0 : i32
    %c0_i32_1 = arith.constant 0 : i32
    return %c0_i32, %c0_i32_0 : i32, i32
  }
  func.func @transform_10(%arg0: i32) -> (i32, i32) {
    %c0_i32 = arith.constant 0 : i32
    %c0_i32_0 = arith.constant 0 : i32
    %c0_i32_1 = arith.constant 0 : i32
    return %c0_i32, %c0_i32_0 : i32, i32
  }
  func.func @transform_11(%arg0: i32) -> (i32, i32) {
    %c0_i32 = arith.constant 0 : i32
    %c0_i32_0 = arith.constant 0 : i32
    return %arg0, %c0_i32 : i32, i32
  }
}

</mosaic_0001>

<bundles_post_ra>
// kernel: tpu_custom_call.1
= control target key start
LH: loop header
LB: loop body
LE: loop exit
PB: predicated region body
PF: predicated region fallthrough
CT: control target
= control target key end

     0   :  { %s1979_s0 = inlined_call_operand.vmem [shape: f32[64,16], index: 0, kind: input, shape index: {}]   ;;  %s1980_s1 = inlined_call_operand.hbm [shape: f32[16,32], index: 1, kind: input, shape index: {}]   ;;  %s1981_s2 = inlined_call_operand.hbm [shape: f32[1,32], index: 2, kind: input, shape index: {}]   ;;  %s1982_s3 = inlined_call_operand.vmem [shape: f32[32,32], index: 3, kind: input, shape index: {}]   ;;  %s1983_s4 = inlined_call_operand.hbm [shape: f32[1,32], index: 4, kind: input, shape index: {}]   ;;  %s1984_s5 = inlined_call_operand.vmem [shape: f32[32,32], index: 5, kind: input, shape index: {}]   ;;  %s1985_s6 = inlined_call_operand.hbm [shape: f32[1,32], index: 6, kind: input, shape index: {}]   ;;  %s1986_s7 = inlined_call_operand.hbm [shape: f32[32,32], index: 7, kind: input, shape index: {}]   ;;  %s1987_s8 = inlined_call_operand.hbm [shape: f32[1,32], index: 8, kind: input, shape index: {}]   ;;  %s1988_s9 = inlined_call_operand.vmem [shape: f32[32,128], index: 9, kind: input, shape index: {}]   ;;  %s1989_s10 = inlined_call_operand.vmem [shape: f32[1,128], index: 10, kind: input, shape index: {}]   ;;  %s1990_s11 = inlined_call_operand.hbm [shape: f32[64,128], index: 11, kind: output, shape index: {}]  }
   0x1   :  { %1995 = sst [smem:[#allocation21_spill]] %s1981_s2 }
   0x2   :  { %1996 = sst [smem:[#allocation22_spill]] %s1985_s6 }
   0x3   :  { %16 = vsyncpa [#allocation3], 0 }
   0x4   :  { %17 = vsyncpa [#allocation6], 0 }
   0x5   :  { %18 = vsyncpa [#allocation9], 0 }
   0x6   :  { %19 = vsyncpa [#allocation12], 0 }
   0x7   :  { %20 = vsyncpa [#allocation4], 0 }
   0x8   :  { %22 = vsyncpa [#allocation4 + $0x1], 0  ;;  %s1731_s17 = smov 0   ;;  %s1733_s18 = smov 0  }
   0x9   :  { %s1735_s19 = smov 0   ;;  %s1737_s20 = smov 0  }
   0xa LB: > { %1997 = sst [smem:[#allocation19_spill]] %s1654_s19  ;;  %s1752_s21 = sadd.s32 4294967295, %s1658_s20   ;;  %s1658_s20 = sphi %s1737_s20, %s2021_s20   ;;  %s1654_s19 = sphi %s1735_s19, %s2018_s19   ;;  %s1650_s18 = sphi %s1733_s18, %s2020_s18   ;;  %s1646_s17 = sphi %s1731_s17, %s2019_s17  }
   0xb   : > { %s1168_s22 = sadd.s32 4294967294, %s1658_s20   ;;  %s1756_s23 = sadd.s32 1, %s1658_s20  }
   0xc   : > { %s271_s24 = sadd.s32 1, %s1654_s19  ;;  %s268_s25 = ssub.s32 %s1658_s20, %s1756_s23 }
   0xd   : > { %p281_p0 = scmp.ne.s32.totalorder %s1654_s19, %s1650_s18  ;;  %p269_p1 = scmp.eq.s32.totalorder %s268_s25, 0 }
   0xe   : > { %p282_p2 = scmp.eq.s32.totalorder %s1752_s21, 1  ;;  %p287_p3 = scmp.ne.s32.totalorder %s1650_s18, %s1646_s17 }
   0xf   : > { %p288_p4 = scmp.eq.s32.totalorder %s1168_s22, 1  ;;  %p1169_p7 = scmp.ge.s32.totalorder %s1658_s20, 1 }
  0x10   : > { %s1767_s26 = scalar_select %p269_p1, %s1654_s19, %s271_s24  }
  0x11   : > { %p1769_p5 = por %p282_p2, %p281_p0  ;;  %p1773_p6 = por %p288_p4, %p287_p3 }
  0x12   : > { %1998 = sst [smem:[#allocation20_spill]] %s1767_s26  ;;  %p295_p8 = scmp.lt.s32.totalorder %s1658_s20, 3 }
  0x13   : > { %s1999_s27 = scalar_select %p1769_p5, 1, 0 }
  0x14   : > { %s2000_s28 = scalar_select %p1773_p6, 1, 0 }
  0x15   : > { %p1991_p9 = scmp.eq.s32.totalorder %s1752_s21, 0  ;;  %p1780_p10 = pnand %p1169_p7, %p295_p8 }
  0x16   : > { %s1660_s30 = smov [#allocation5]   ;;  %s1661_s13 = smov [#allocation8]  }
  0x17   : > { %s2001_s29 = scalar_select %p1780_p10, 1, 0 }
  0x18   : > { %s321_s12 = sshll.u32 %s1660_s30, 4  ;;  %p1348_p11 = pneg %p1780_p10  ;;  %s322_s12 = int_to_ptr.vmem [resolvable:$true] %s321_s12 }
  0x19   : > { %s349_s14 = sshll.u32 %s1661_s13, 4  ;;  %s1662_s16 = smov [#allocation2]   ;;  %s350_s14 = int_to_ptr.vmem [resolvable:$true] %s349_s14 }
  0x1a   : > { %p1788_p12 = pnand %p1991_p9, %p1348_p11  ;;  %s307_s22 = sshll.u32 %s1662_s16, 4  ;;  %s1792_s22 = int_to_ptr.vmem [resolvable:$true] %s307_s22 }
  0x1b   : > { %s1437_s25 = scalar_lea.vmem %s322_s12, 16  ;;  %s1444_s30 = scalar_lea.vmem %s322_s12, 32 }
  0x1c   : > { %p1796_p13 = pneg %p1788_p12  ;;  %p1438_p0 = scmp.ne.s32.totalorder %s322_s12, %s1437_s25 }
  0x1d   : > { %p1445_p3 = scmp.lt.s32.totalorder %s322_s12, %s322_s12  ;;  %p1446_p4 = scmp.lt.s32.totalorder %s1444_s30, %s1437_s25 }
  0x1e   : > { %p1440_p1 = pnand %p1438_p0, %p1796_p13 }
  0x1f   : > { %p1447_p7 = por %p1446_p4, %p1445_p3 }
  0x20   : > { %p1441_p2 = pneg %p1440_p1 }
  0x22   : > { %p1448_p8 = pnand %p1447_p7, %p1441_p2 }
  0x24   : > { %1451 = shalt.err (!%p1448_p8)
}
  0x25   : > { %s2004_s2 = sld [smem:[#allocation21_spill]]  ;;  %s1463_s26 = scalar_lea.vmem %s350_s14, 16 }
  0x26   : > { %p1464_p11 = scmp.ne.s32.totalorder %s350_s14, %s1463_s26  ;;  %s1470_s19 = scalar_lea.vmem %s350_s14, 32 }
  0x27   : > { %p1471_p0 = scmp.lt.s32.totalorder %s350_s14, %s350_s14  ;;  %p1472_p1 = scmp.lt.s32.totalorder %s1470_s19, %s1463_s26 }
  0x28   : > { %p1466_p9 = pnand %p1464_p11, %p1796_p13 }
  0x29   : > { %p1473_p5 = por %p1472_p1, %p1471_p0 }
  0x2a   : > { %p1467_p6 = pneg %p1466_p9 }
  0x2b   : > { %1354 = dma.hbm_to_vmem [thread:$0]  (!%p1788_p12), %s2004_s2, 16, %s322_s12, [#allocation6]  }
  0x2c   : > { %p1474_p10 = pnand %p1473_p5, %p1467_p6 }
  0x2e   : > { %1477 = shalt.err (!%p1474_p10)
}
  0x2f   : > { %s2005_s6 = sld [smem:[#allocation22_spill]]  ;;  %s1489_s12 = scalar_lea.vmem %s1792_s22, 256 }
  0x30   : > { %p1490_p2 = scmp.ne.s32.totalorder %s1792_s22, %s1489_s12  ;;  %p1497_p4 = scmp.lt.s32.totalorder %s1792_s22, %s1792_s22 }
  0x31   : > { %p1498_p7 = scmp.lt.s32.totalorder %s1489_s12, %s1489_s12 }
  0x32   : > { %p1492_p9 = pnand %p1490_p2, %p1796_p13 }
  0x33   : > { %p1499_p5 = por %p1498_p7, %p1497_p4 }
  0x34   : > { %p1493_p3 = pneg %p1492_p9 }
  0x35   : > { %1360 = dma.hbm_to_vmem [thread:$0]  (!%p1788_p12), %s2005_s6, 16, %s350_s14, [#allocation9]  }
  0x36   : > { %p1500_p6 = pnand %p1499_p5, %p1493_p3 }
  0x38   : > { %1503 = shalt.err (!%p1500_p6)
}
  0x39   : > { %s1663_s19 = smov 128   ;;  %s1664_s26 = smov 8  }
  0x3a   : > { %1351 = dma.hbm_to_vmem [thread:$0]  (!%p1788_p12), %s1980_s1, 256, %s1792_s22, [#allocation3], %s1663_s19, %s1663_s19, %s1664_s26  }
  0x3b   : > { %s1665_s16 = smov [#allocation7]   ;;  %s1666_s30 = smov [#allocation10]  }
  0x3c   : > { %s335_s25 = sshll.u32 %s1665_s16, 4  ;;  %s359_s12 = sshll.u32 %s1666_s30, 4  ;;  %s336_s25 = int_to_ptr.vmem [resolvable:$true] %s335_s25  ;;  %s360_s12 = int_to_ptr.vmem [resolvable:$true] %s359_s12 }
  0x3d   : > { %s1515_s2 = scalar_lea.vmem %s336_s25, 16  ;;  %s1522_s6 = scalar_lea.vmem %s336_s25, 32 }
  0x3e   : > { %p1516_p10 = scmp.ne.s32.totalorder %s336_s25, %s1515_s2  ;;  %p1523_p0 = scmp.lt.s32.totalorder %s336_s25, %s336_s25 }
  0x3f   : > { %p1524_p1 = scmp.lt.s32.totalorder %s1522_s6, %s1515_s2 }
  0x40   : > { %p1518_p8 = pnand %p1516_p10, %p1796_p13 }
  0x41   : > { %p1525_p2 = por %p1524_p1, %p1523_p0 }
  0x42   : > { %p1519_p11 = pneg %p1518_p8 }
  0x44   : > { %p1526_p9 = pnand %p1525_p2, %p1519_p11 }
  0x46   : > { %1529 = shalt.err (!%p1526_p9)
}
  0x47   : > { %1357 = dma.hbm_to_vmem [thread:$0]  (!%p1788_p12), %s1983_s4, 16, %s336_s25, [#allocation6]  }
  0x48   : > { %s1541_s13 = scalar_lea.vmem %s360_s12, 512  ;;  %p1549_p5 = scmp.lt.s32.totalorder %s360_s12, %s360_s12 }
  0x49   : > { %p1542_p3 = scmp.ne.s32.totalorder %s360_s12, %s1541_s13  ;;  %p1550_p6 = scmp.lt.s32.totalorder %s1541_s13, %s1541_s13 }
  0x4b   : > { %p1544_p4 = pnand %p1542_p3, %p1796_p13  ;;  %p1551_p10 = por %p1550_p6, %p1549_p5 }
  0x4d   : > { %p1545_p7 = pneg %p1544_p4 }
  0x4f   : > { %p1552_p8 = pnand %p1551_p10, %p1545_p7 }
  0x51   : > { %1555 = shalt.err (!%p1552_p8)
}
  0x52   : > { %1363 = dma.hbm_to_vmem [thread:$0]  (!%p1788_p12), %s1986_s7, 512, %s360_s12, [#allocation9], %s1663_s19, %s1663_s19, %s1664_s26  }
  0x53   : > { %s1667_s16 = smov [#allocation11]  }
  0x54   : > { %s373_s25 = sshll.u32 %s1667_s16, 4  ;;  %s374_s25 = int_to_ptr.vmem [resolvable:$true] %s373_s25 }
  0x55   : > { %s1567_s30 = scalar_lea.vmem %s374_s25, 16  ;;  %s1574_s14 = scalar_lea.vmem %s374_s25, 32 }
  0x56   : > { %p1568_p11 = scmp.ne.s32.totalorder %s374_s25, %s1567_s30  ;;  %p1575_p2 = scmp.lt.s32.totalorder %s374_s25, %s374_s25 }
  0x57   : > { %p1576_p9 = scmp.lt.s32.totalorder %s1574_s14, %s1567_s30 }
  0x58   : > { %p1570_p0 = pnand %p1568_p11, %p1796_p13 }
  0x59   : > { %p1577_p3 = por %p1576_p9, %p1575_p2 }
  0x5a   : > { %p1571_p1 = pneg %p1570_p0 }
  0x5c   : > { %p1578_p4 = pnand %p1577_p3, %p1571_p1 }
  0x5e   : > { %1581 = shalt.err (!%p1578_p4)
}
  0x5f   : > { %1366 = dma.hbm_to_vmem [thread:$0]  (!%p1788_p12), %s1987_s8, 16, %s374_s25, [#allocation12]  }
  0x60   : > { %p2006_p7 = scmp.ne.s32.totalorder %s2001_s29, 0 }
  0x61   : > { %p2007_p5 = scmp.eq.s32.totalorder (!%p2006_p7), %s1752_s21, 0 }
  0x62   : > { %401 = sbr.rel (%p2006_p7) target bundleno = 1136 (0x470), region = 64 }
  0x67   : > { %1625 = dma.done.wait (%p2007_p5), [#allocation3], 256   ;;  %p2008_p13 = pmov %p2007_p5 }
  0x68   : > { %p2009_p6 = pmov %p2007_p5 }
  0x69   : > { %1627 = vsyncadd (%p2008_p13), [#allocation3], 4294967040 }
  0x6a   : > { %1629 = dma.done.wait (%p2009_p6), [#allocation6], 32   ;;  %p2010_p10 = pmov %p2007_p5 }
  0x6b   : > { %p2011_p8 = pmov %p2007_p5 }
  0x6c   : > { %1631 = vsyncadd (%p2010_p10), [#allocation6], 4294967264 }
  0x6d   : > { %1633 = dma.done.wait (%p2011_p8), [#allocation9], 528   ;;  %p2012_p12 = pmov %p2007_p5 }
  0x6e   : > { %p2013_p11 = pmov %p2007_p5 }
  0x6f   : > { %1635 = vsyncadd (%p2012_p12), [#allocation9], 4294966768 }
  0x70   : > { %1637 = dma.done.wait (%p2013_p11), [#allocation12], 16   ;;  %p2014_p0 = pmov %p2007_p5 }
  0x71   : > { %s1185_s29 = sshll.u32 %s1752_s21, 2  ;;  %vm481_vm0 = vcmask 130048   ;;  %v473_v0 = vld [vmem:[#allocation2 + $0x8] sm:$0xff]  ;;  %v472_v1 = vld [vmem:[#allocation2] sm:$0xff]  ;;  %v586_v6 = vld [vmem:[%s1982_s3 + $0x18] sm:$0xff]  ;;  %vm594_vm1 = vcmask 261120  }
  0x72   : > { %1639 = vsyncadd (%p2014_p0), [#allocation12], 4294967280  ;;  %p462_p1 = scmp.lt.s32.totalorder %s1185_s29, 7  ;;  %1256 = vmatprep.subr.mxu0 %v473_v0  ;;  %1266 = vmatprep.subr.mxu1 %v586_v6  ;;  %v585_v7 = vld [vmem:[%s1982_s3 + $0x10] sm:$0xff]  ;;  %v584_v8 = vld [vmem:[%s1982_s3 + $0x8] sm:$0xff]  ;;  %s1217_s6 = sshll.u32 %s1752_s21, 9 }
  0x73   : > { %1257 = vmatpush3.msra.mxu0 %v473_v0  ;;  %1267 = vmatpush3.msra.mxu1 %v586_v6  ;;  %v583_v9 = vld [vmem:[%s1982_s3] sm:$0xff]  ;;  %v699_v10 = vld [vmem:[%s1984_s5 + $0x18] sm:$0xff]  ;;  %v1187_v11 = vld [vmem:[#allocation5] ss:$0 sm:$0xff]  ;;  %s1937_s30 = scalar_lea.hbm %s1990_s11, %s1217_s6  ;;  %p2015_p9 = scmp.ne.s32.totalorder %s1999_s27, 0 }
  0x74   : > { %s2023_s29 = smov (!%p462_p1, %s1185_s29), 7  ;;  %1258 = vmatprep.subr.mxu0 %v472_v1  ;;  %1268 = vmatprep.subr.mxu1 %v585_v7  ;;  %v698_v24 = vld [vmem:[%s1984_s5 + $0x10] sm:$0xff]  ;;  %v697_v25 = vld [vmem:[%s1984_s5 + $0x8] sm:$0xff]  ;;  %v696_v26 = vld [vmem:[%s1984_s5] sm:$0xff]  ;;  %s1668_s22 = smov [#allocation13]  }
  0x75   : > { %s1186_s15 = sshll.u32 %s2023_s29, 3  ;;  %1259 = vmatpush3.msra.mxu0 %v472_v1  ;;  %1269 = vmatpush3.msra.mxu1 %v585_v7  ;;  %v811_v27 = vld [vmem:[#allocation10 + $0x18] sm:$0xff]  ;;  %v810_v41 = vld [vmem:[#allocation10 + $0x10] sm:$0xff]  ;;  %v809_v42 = vld [vmem:[#allocation10 + $0x8] sm:$0xff]  ;;  %s1586_s13 = sshll.u32 %s1668_s22, 4  ;;  %s1587_s13 = int_to_ptr.vmem [resolvable:$false] %s1586_s13 }
  0x76   : > { %s465_s26 = scalar_lea.vmem %s1979_s0, %s1186_s15  ;;  %1270 = vmatprep.subr.mxu1 %v584_v8  ;;  %1280 = vmatprep.subr.mxu0 %v699_v10  ;;  %v1192_v28 = vld [vmem:[#allocation7] ss:$0 sm:$0xff]  ;;  %v808_v43 = vld [vmem:[#allocation10] sm:$0xff]  ;;  %v1197_v45 = vld [vmem:[#allocation8] ss:$0 sm:$0xff]  ;;  %s458_s15 = sand.u32 1, %s1650_s18  }
  0x77   : > { %v468_v2 = vld [vmem:[%s465_s26] sm:$0xff]  ;;  %v469_v3 = vld [vmem:[%s465_s26 + $0x8] sm:$0xff]  ;;  %v470_v4 = vld [vmem:[%s465_s26 + $0x10] sm:$0xff]  ;;  %1271 = vmatpush3.msra.mxu1 %v584_v8  ;;  %s1184_s24 = sshll.u32 %s458_s15, 5  ;;  %s1939_s14 = scalar_lea.sflag [#allocation4], %s458_s15 }
  0x78   : > { %1260 = vmatprep.mubr.msk.f32.mxu0 %vm481_vm0, %v468_v2  ;;  %v471_v5 = vld [vmem:[%s465_s26 + $0x18] sm:$0xff]  ;;  %1272 = vmatprep.subr.mxu1 %v583_v9  ;;  %v922_v58 = vld [vmem:[%s1988_s9 + $0x10] sm:$0xff]  ;;  %v921_v59 = vld [vmem:[%s1988_s9 + $0x8] sm:$0xff]  ;;  %s460_s12 = scalar_lea.vmem [#allocation13], %s1184_s24  ;;  %s1588_s29 = scalar_lea.vmem %s1587_s13, 1024 }
  0x79   : > { %1261 = vmatmul.mubr.msk.f32.vlgmr.msra.gmra.mxu0 %vm481_vm0, %v469_v3  ;;  %1273 = vmatpush3.msra.mxu1 %v583_v9  ;;  %v923_v44 = vld [vmem:[%s1988_s9 + $0x18] sm:$0xff]  ;;  %v920_v60 = vld [vmem:[%s1988_s9] sm:$0xff]  ;;  %v1202_v61 = vld [vmem:[#allocation11] ss:$0 sm:$0xff]  ;;  %s1046_s2 = sshll.u32 %s460_s12, 4  ;;  %s1932_s2 = int_to_ptr.vmem [resolvable:$true] %s1046_s2 }
  0x7a   : > { %1263 = vmatprep.mubr.msk.f32.mxu0 %vm481_vm0, %v470_v4  ;;  %1281 = vmatpush3.msra.mxu0 %v699_v10  ;;  %v1207_v10 = vld [vmem:[%s1989_s10] ss:$0 sm:$0xff]  ;;  %s1582_s21 = scalar_lea.vmem %s1932_s2, 512  ;;  %p1589_p7 = scmp.lt.s32.totalorder %s1932_s2, %s1587_s13 }
  0x7b   : > { %1282 = vmatprep.subr.mxu0 %v698_v24  ;;  %1294 = vmatprep.subr.mxu1 %v811_v27  ;;  %p1583_p2 = scmp.ne.s32.totalorder %s1932_s2, %s1582_s21  ;;  %p1590_p5 = scmp.lt.s32.totalorder %s1588_s29, %s1582_s21 }
  0x7c   : > { %1283 = vmatpush3.msra.mxu0 %v698_v24 }
  0x7d   : > { %1264 = vmatmul.mubr.msk.f32.gmra.mxu0 %vm481_vm0, %v471_v5  ;;  %1284 = vmatprep.subr.mxu0 %v697_v25  ;;  %p1584_p3 = pnand %p1583_p2, %p2015_p9  ;;  %p1591_p13 = por %p1590_p5, %p1589_p7 }
  0x7e   : > { %1285 = vmatpush3.msra.mxu0 %v697_v25 }
  0x7f   : > { %1286 = vmatprep.subr.mxu0 %v696_v26  ;;  %p1585_p4 = pneg %p1584_p3 }
  0x80   : > { %1287 = vmatpush3.msra.mxu0 %v696_v26 }
  0x81   : > { %1308 = vmatprep.subr.mxu0 %v923_v44  ;;  %p1592_p6 = pnand %p1591_p13, %p1585_p4 }
 0x139   : > { %v1262_v12 = vpop.f32.mrf.mxu0 }
 0x13a   : > { %v566_v13 = vadd.f32 %v1262_v12, %v1187_v11 }
 0x13b   : > { %v560_v14 = vpop.f32.mrf.mxu0 }
 0x13c   : > { %v561_v15 = vadd.f32 %v1187_v11, %v560_v14  ;;  %v580_v18 = vmax.f32 %v566_v13, 0.0 }
 0x13d   : > { %v1265_v16 = vpop.f32.mrf.mxu0 }
 0x13e   : > { %v579_v17 = vmax.f32 %v561_v15, 0.0  ;;  %v576_v19 = vadd.f32 %v1265_v16, %v1187_v11 }
 0x13f   : > { %v570_v20 = vpop.f32.mrf.mxu0 }
 0x140   : > { %v571_v21 = vadd.f32 %v1187_v11, %v570_v20  ;;  %1274 = vmatprep.mubr.msk.f32.mxu1 %vm594_vm1, %v579_v17  ;;  %v582_v23 = vmax.f32 %v576_v19, 0.0 }
 0x141   : > { %1275 = vmatmul.mubr.msk.f32.vlgmr.msra.gmra.mxu1 %vm594_vm1, %v580_v18 }
 0x142   : > { %v581_v22 = vmax.f32 %v571_v21, 0.0  ;;  %1295 = vmatpush3.msra.mxu1 %v811_v27 }
 0x143   : > { %1296 = vmatprep.subr.mxu1 %v810_v41 }
 0x144   : > { %1277 = vmatprep.mubr.msk.f32.mxu1 %vm594_vm1, %v581_v22  ;;  %1297 = vmatpush3.msra.mxu1 %v810_v41 }
 0x145   : > { %1278 = vmatmul.mubr.msk.f32.gmra.mxu1 %vm594_vm1, %v582_v23  ;;  %1298 = vmatprep.subr.mxu1 %v809_v42 }
 0x146   : > { %1299 = vmatpush3.msra.mxu1 %v809_v42 }
 0x147   : > { %1300 = vmatprep.subr.mxu1 %v808_v43 }
 0x148   : > { %1301 = vmatpush3.msra.mxu1 %v808_v43 }
 0x201   : > { %v1276_v29 = vpop.f32.mrf.mxu1 }
 0x202   : > { %v679_v30 = vadd.f32 %v1276_v29, %v1192_v28 }
 0x203   : > { %v673_v31 = vpop.f32.mrf.mxu1 }
 0x204   : > { %v674_v32 = vadd.f32 %v1192_v28, %v673_v31  ;;  %v693_v35 = vmax.f32 %v679_v30, 0.0 }
 0x205   : > { %v1279_v33 = vpop.f32.mrf.mxu1 }
 0x206   : > { %v692_v34 = vmax.f32 %v674_v32, 0.0  ;;  %v689_v36 = vadd.f32 %v1279_v33, %v1192_v28 }
 0x207   : > { %v683_v37 = vpop.f32.mrf.mxu1 }
 0x208   : > { %v684_v38 = vadd.f32 %v1192_v28, %v683_v37  ;;  %1288 = vmatprep.mubr.msk.f32.mxu0 %vm594_vm1, %v692_v34  ;;  %v695_v40 = vmax.f32 %v689_v36, 0.0 }
 0x209   : > { %1289 = vmatmul.mubr.msk.f32.vlgmr.msra.gmra.mxu0 %vm594_vm1, %v693_v35 }
 0x20a   : > { %v694_v39 = vmax.f32 %v684_v38, 0.0  ;;  %1309 = vmatpush3.msra.mxu0 %v923_v44 }
 0x20b   : > { %1310 = vmatprep.subr.mxu0 %v922_v58 }
 0x20c   : > { %1291 = vmatprep.mubr.msk.f32.mxu0 %vm594_vm1, %v694_v39  ;;  %1311 = vmatpush3.msra.mxu0 %v922_v58 }
 0x20d   : > { %1292 = vmatmul.mubr.msk.f32.gmra.mxu0 %vm594_vm1, %v695_v40  ;;  %1312 = vmatprep.subr.mxu0 %v921_v59 }
 0x20e   : > { %1313 = vmatpush3.msra.mxu0 %v921_v59 }
 0x20f   : > { %1314 = vmatprep.subr.mxu0 %v920_v60 }
 0x210   : > { %1315 = vmatpush3.msra.mxu0 %v920_v60 }
 0x2c9   : > { %v1290_v46 = vpop.f32.mrf.mxu0 }
 0x2ca   : > { %v791_v47 = vadd.f32 %v1290_v46, %v1197_v45 }
 0x2cb   : > { %v785_v48 = vpop.f32.mrf.mxu0 }
 0x2cc   : > { %v786_v49 = vadd.f32 %v1197_v45, %v785_v48  ;;  %v805_v52 = vmax.f32 %v791_v47, 0.0 }
 0x2cd   : > { %v1293_v50 = vpop.f32.mrf.mxu0 }
 0x2ce   : > { %v804_v51 = vmax.f32 %v786_v49, 0.0  ;;  %v801_v53 = vadd.f32 %v1293_v50, %v1197_v45 }
 0x2cf   : > { %v795_v54 = vpop.f32.mrf.mxu0 }
 0x2d0   : > { %v796_v55 = vadd.f32 %v1197_v45, %v795_v54  ;;  %1302 = vmatprep.mubr.msk.f32.mxu1 %vm594_vm1, %v804_v51  ;;  %v807_v57 = vmax.f32 %v801_v53, 0.0 }
 0x2d1   : > { %1303 = vmatmul.mubr.msk.f32.vlgmr.msra.gmra.mxu1 %vm594_vm1, %v805_v52 }
 0x2d2   : > { %v806_v56 = vmax.f32 %v796_v55, 0.0 }
 0x2d4   : > { %1305 = vmatprep.mubr.msk.f32.mxu1 %vm594_vm1, %v806_v56 }
 0x2d5   : > { %1306 = vmatmul.mubr.msk.f32.gmra.mxu1 %vm594_vm1, %v807_v57 }
 0x391   : > { %v1304_v62 = vpop.f32.mrf.mxu1 }
 0x392   : > { %v903_v63 = vadd.f32 %v1304_v62, %v1202_v61 }
 0x393   : > { %v897_v0 = vpop.f32.mrf.mxu1 }
 0x394   : > { %v898_v1 = vadd.f32 %v1202_v61, %v897_v0  ;;  %v917_v4 = vmax.f32 %v903_v63, 0.0 }
 0x395   : > { %v1307_v2 = vpop.f32.mrf.mxu1 }
 0x396   : > { %v916_v3 = vmax.f32 %v898_v1, 0.0  ;;  %v913_v5 = vadd.f32 %v1307_v2, %v1202_v61 }
 0x397   : > { %v907_v6 = vpop.f32.mrf.mxu1 }
 0x398   : > { %v908_v7 = vadd.f32 %v1202_v61, %v907_v6  ;;  %1316 = vmatprep.mubr.msk.f32.mxu0 %vm594_vm1, %v916_v3  ;;  %v919_v9 = vmax.f32 %v913_v5, 0.0 }
 0x399   : > { %1317 = vmatmul.mubr.msk.f32.vlgmr.msra.gmra.mxu0 %vm594_vm1, %v917_v4 }
 0x39a   : > { %v918_v8 = vmax.f32 %v908_v7, 0.0 }
 0x39c   : > { %1319 = vmatprep.mubr.msk.f32.mxu0 %vm594_vm1, %v918_v8 }
 0x39d   : > { %1320 = vmatmul.mubr.msk.f32.gmra.mxu0 %vm594_vm1, %v919_v9 }
 0x459   : > { %v1318_v11 = vpop.f32.mrf.mxu0 }
 0x45a   : > { %v1015_v12 = vadd.f32 %v1318_v11, %v1207_v10 }
 0x45b   : > { %v1009_v13 = vpop.f32.mrf.mxu0 }
 0x45c   : > { %1029 = vst [vmem:[%s460_s12 + $0x8] sm:$0xff] %v1015_v12  ;;  %v1010_v14 = vadd.f32 %v1207_v10, %v1009_v13 }
 0x45d   : > { %v1321_v15 = vpop.f32.mrf.mxu0 }
 0x45e   : > { %1028 = vst [vmem:[%s460_s12] sm:$0xff] %v1010_v14  ;;  %v1025_v16 = vadd.f32 %v1321_v15, %v1207_v10 }
 0x45f   : > { %v1019_v17 = vpop.f32.mrf.mxu0 }
 0x460   : > { %1031 = vst [vmem:[%s460_s12 + $0x18] sm:$0xff] %v1025_v16  ;;  %v1020_v18 = vadd.f32 %v1207_v10, %v1019_v17 }
 0x462   : > { %1030 = vst [vmem:[%s460_s12 + $0x10] sm:$0xff] %v1020_v18 }
 0x463   : > { %1595 = shalt.err (!%p1592_p6)
}
 0x464   : > { %s1596_s15 = scalar_lea.hbm %s1937_s30, 512  ;;  %s1600_s26 = scalar_lea.hbm %s1990_s11, 1024 }
 0x465   : > { %p1597_p10 = scmp.ne.s32.totalorder %s1937_s30, %s1596_s15  ;;  %p1601_p11 = scmp.lt.s32.totalorder %s1937_s30, %s1990_s11 }
 0x466   : > { %p1602_p0 = scmp.lt.s32.totalorder %s1600_s26, %s1596_s15 }
 0x467   : > { %p1598_p8 = pnand %p1597_p10, %p2015_p9 }
 0x468   : > { %p1603_p1 = por %p1602_p0, %p1601_p11 }
 0x469   : > { %p1599_p12 = pneg %p1598_p8 }
 0x46b   : > { %p1604_p2 = pnand %p1603_p1, %p1599_p12 }
 0x46d   : > { %1607 = shalt.err (!%p1604_p2)
}
 0x46e   : > { %s1669_s16 = smov 128   ;;  %s1670_s25 = smov 8  }
 0x46f   : > { %1346 = dma.vmem_to_hbm [thread:$0]  (%p2015_p9), %s1932_s2, 512, %s1937_s30, %s1939_s14, %s1669_s16, %s1669_s16, %s1670_s25  }
 0x470 PF: > { %p1383_p3 = scmp.ge.s32.totalorder %s1658_s20, 2  ;;  %s1061_s21 = sand.u32 1, %s1646_s17  }
 0x471   : > { %p2016_p4 = scmp.ne.s32.totalorder %s2000_s28, 0  ;;  %s1062_s22 = scalar_lea.sflag [#allocation4], %s1061_s21 }
 0x473   : > { %p1368_p7 = pnand %p1383_p3, %p2016_p4 }
 0x475   : > { %p1369_p5 = pneg %p1368_p7 }
 0x477   : > { %1641 = dma.done.wait (%p1369_p5), %s1062_s22, 512  }
 0x478   : > { %1643 = vsyncadd (%p1369_p5), %s1062_s22, 4294966784  ;;  %s2017_s13 = sld [smem:[#allocation19_spill]]  ;;  %p25_p13 = scmp.ge.s32.totalorder %s1756_s23, 4  }
 0x479   : > { %s2018_s19 = sld [smem:[#allocation20_spill]]  ;;  %s2019_s17 = smov %s1650_s18 }
 0x47a   : > { %s2021_s20 = smov %s1756_s23  ;;  %27 = sbr.rel (!%p25_p13) target bundleno = 10 (0xa), region = 124 }
 0x47e   : > { %s2020_s18 = smov %s2017_s13 }
 0x47f   :  { %1067 = vsyncpa [#allocation3], 1 }
 0x480   :  { %1069 = vsyncpa [#allocation3 + $0x1], 1 }
 0x481   :  { %1070 = vsyncpa [#allocation6], 1 }
 0x482   :  { %1071 = vsyncpa [#allocation9], 1 }
 0x483   :  { %1072 = vsyncpa [#allocation12], 1 }
 0x484   :  { %1073 = vsyncpa [#allocation4], 1 }
 0x485   :  { %1075 = vsyncpa [#allocation4 + $0x1], 1 }

// kernel: tpu_custom_call.1
= control target key start
LH: loop header
LB: loop body
LE: loop exit
PB: predicated region body
PF: predicated region fallthrough
CT: control target
= control target key end

     0   :  { %s1979_s0 = inlined_call_operand.vmem [shape: f32[64,16], index: 0, kind: input, shape index: {}]   ;;  %s1980_s1 = inlined_call_operand.hbm [shape: f32[16,32], index: 1, kind: input, shape index: {}]   ;;  %s1981_s2 = inlined_call_operand.hbm [shape: f32[1,32], index: 2, kind: input, shape index: {}]   ;;  %s1982_s3 = inlined_call_operand.vmem [shape: f32[32,32], index: 3, kind: input, shape index: {}]   ;;  %s1983_s4 = inlined_call_operand.hbm [shape: f32[1,32], index: 4, kind: input, shape index: {}]   ;;  %s1984_s5 = inlined_call_operand.vmem [shape: f32[32,32], index: 5, kind: input, shape index: {}]   ;;  %s1985_s6 = inlined_call_operand.hbm [shape: f32[1,32], index: 6, kind: input, shape index: {}]   ;;  %s1986_s7 = inlined_call_operand.hbm [shape: f32[32,32], index: 7, kind: input, shape index: {}]   ;;  %s1987_s8 = inlined_call_operand.hbm [shape: f32[1,32], index: 8, kind: input, shape index: {}]   ;;  %s1988_s9 = inlined_call_operand.vmem [shape: f32[32,128], index: 9, kind: input, shape index: {}]   ;;  %s1989_s10 = inlined_call_operand.vmem [shape: f32[1,128], index: 10, kind: input, shape index: {}]   ;;  %s1990_s11 = inlined_call_operand.hbm [shape: f32[64,128], index: 11, kind: output, shape index: {}]  }
   0x1   :  { %1995 = sst [smem:[#allocation21_spill]] %s1981_s2 }
   0x2   :  { %1996 = sst [smem:[#allocation22_spill]] %s1985_s6 }
   0x3   :  { %16 = vsyncpa [#allocation3], 0 }
   0x4   :  { %17 = vsyncpa [#allocation6], 0 }
   0x5   :  { %18 = vsyncpa [#allocation9], 0 }
   0x6   :  { %19 = vsyncpa [#allocation12], 0 }
   0x7   :  { %20 = vsyncpa [#allocation4], 0 }
   0x8   :  { %22 = vsyncpa [#allocation4 + $0x1], 0  ;;  %s1731_s17 = smov 0   ;;  %s1733_s18 = smov 0  }
   0x9   :  { %s1735_s19 = smov 0   ;;  %s1737_s20 = smov 0  }
   0xa LB: > { %1997 = sst [smem:[#allocation19_spill]] %s1654_s19  ;;  %s1752_s21 = sadd.s32 4294967295, %s1658_s20   ;;  %s1658_s20 = sphi %s1737_s20, %s2021_s20   ;;  %s1654_s19 = sphi %s1735_s19, %s2018_s19   ;;  %s1650_s18 = sphi %s1733_s18, %s2020_s18   ;;  %s1646_s17 = sphi %s1731_s17, %s2019_s17  }
   0xb   : > { %s1168_s22 = sadd.s32 4294967294, %s1658_s20   ;;  %s1756_s23 = sadd.s32 1, %s1658_s20  }
   0xc   : > { %s271_s24 = sadd.s32 1, %s1654_s19  ;;  %s268_s25 = ssub.s32 %s1658_s20, %s1756_s23 }
   0xd   : > { %p281_p0 = scmp.ne.s32.totalorder %s1654_s19, %s1650_s18  ;;  %p269_p1 = scmp.eq.s32.totalorder %s268_s25, 0 }
   0xe   : > { %p282_p2 = scmp.eq.s32.totalorder %s1752_s21, 1  ;;  %p287_p3 = scmp.ne.s32.totalorder %s1650_s18, %s1646_s17 }
   0xf   : > { %p288_p4 = scmp.eq.s32.totalorder %s1168_s22, 1  ;;  %p1169_p7 = scmp.ge.s32.totalorder %s1658_s20, 1 }
  0x10   : > { %s1767_s26 = scalar_select %p269_p1, %s1654_s19, %s271_s24  }
  0x11   : > { %p1769_p5 = por %p282_p2, %p281_p0  ;;  %p1773_p6 = por %p288_p4, %p287_p3 }
  0x12   : > { %1998 = sst [smem:[#allocation20_spill]] %s1767_s26  ;;  %p295_p8 = scmp.lt.s32.totalorder %s1658_s20, 3 }
  0x13   : > { %s1999_s27 = scalar_select %p1769_p5, 1, 0 }
  0x14   : > { %s2000_s28 = scalar_select %p1773_p6, 1, 0 }
  0x15   : > { %p1991_p9 = scmp.eq.s32.totalorder %s1752_s21, 0  ;;  %p1780_p10 = pnand %p1169_p7, %p295_p8 }
  0x16   : > { %s1660_s30 = smov [#allocation5]   ;;  %s1661_s13 = smov [#allocation8]  }
  0x17   : > { %s2001_s29 = scalar_select %p1780_p10, 1, 0 }
  0x18   : > { %s321_s12 = sshll.u32 %s1660_s30, 4  ;;  %p1348_p11 = pneg %p1780_p10  ;;  %s322_s12 = int_to_ptr.vmem [resolvable:$true] %s321_s12 }
  0x19   : > { %s349_s14 = sshll.u32 %s1661_s13, 4  ;;  %s1662_s16 = smov [#allocation2]   ;;  %s350_s14 = int_to_ptr.vmem [resolvable:$true] %s349_s14 }
  0x1a   : > { %p1788_p12 = pnand %p1991_p9, %p1348_p11  ;;  %s307_s22 = sshll.u32 %s1662_s16, 4  ;;  %s1792_s22 = int_to_ptr.vmem [resolvable:$true] %s307_s22 }
  0x1b   : > { %s1437_s25 = scalar_lea.vmem %s322_s12, 16  ;;  %s1444_s30 = scalar_lea.vmem %s322_s12, 32 }
  0x1c   : > { %p1796_p13 = pneg %p1788_p12  ;;  %p1438_p0 = scmp.ne.s32.totalorder %s322_s12, %s1437_s25 }
  0x1d   : > { %p1445_p3 = scmp.lt.s32.totalorder %s322_s12, %s322_s12  ;;  %p1446_p4 = scmp.lt.s32.totalorder %s1444_s30, %s1437_s25 }
  0x1e   : > { %p1440_p1 = pnand %p1438_p0, %p1796_p13 }
  0x1f   : > { %p1447_p7 = por %p1446_p4, %p1445_p3 }
  0x20   : > { %p1441_p2 = pneg %p1440_p1 }
  0x22   : > { %p1448_p8 = pnand %p1447_p7, %p1441_p2 }
  0x24   : > { %1451 = shalt.err (!%p1448_p8)
}
  0x25   : > { %s2004_s2 = sld [smem:[#allocation21_spill]]  ;;  %s1463_s26 = scalar_lea.vmem %s350_s14, 16 }
  0x26   : > { %p1464_p11 = scmp.ne.s32.totalorder %s350_s14, %s1463_s26  ;;  %s1470_s19 = scalar_lea.vmem %s350_s14, 32 }
  0x27   : > { %p1471_p0 = scmp.lt.s32.totalorder %s350_s14, %s350_s14  ;;  %p1472_p1 = scmp.lt.s32.totalorder %s1470_s19, %s1463_s26 }
  0x28   : > { %p1466_p9 = pnand %p1464_p11, %p1796_p13 }
  0x29   : > { %p1473_p5 = por %p1472_p1, %p1471_p0 }
  0x2a   : > { %p1467_p6 = pneg %p1466_p9 }
  0x2b   : > { %1354 = dma.hbm_to_vmem [thread:$0]  (!%p1788_p12), %s2004_s2, 16, %s322_s12, [#allocation6]  }
  0x2c   : > { %p1474_p10 = pnand %p1473_p5, %p1467_p6 }
  0x2e   : > { %1477 = shalt.err (!%p1474_p10)
}
  0x2f   : > { %s2005_s6 = sld [smem:[#allocation22_spill]]  ;;  %s1489_s12 = scalar_lea.vmem %s1792_s22, 256 }
  0x30   : > { %p1490_p2 = scmp.ne.s32.totalorder %s1792_s22, %s1489_s12  ;;  %p1497_p4 = scmp.lt.s32.totalorder %s1792_s22, %s1792_s22 }
  0x31   : > { %p1498_p7 = scmp.lt.s32.totalorder %s1489_s12, %s1489_s12 }
  0x32   : > { %p1492_p9 = pnand %p1490_p2, %p1796_p13 }
  0x33   : > { %p1499_p5 = por %p1498_p7, %p1497_p4 }
  0x34   : > { %p1493_p3 = pneg %p1492_p9 }
  0x35   : > { %1360 = dma.hbm_to_vmem [thread:$0]  (!%p1788_p12), %s2005_s6, 16, %s350_s14, [#allocation9]  }
  0x36   : > { %p1500_p6 = pnand %p1499_p5, %p1493_p3 }
  0x38   : > { %1503 = shalt.err (!%p1500_p6)
}
  0x39   : > { %s1663_s19 = smov 128   ;;  %s1664_s26 = smov 8  }
  0x3a   : > { %1351 = dma.hbm_to_vmem [thread:$0]  (!%p1788_p12), %s1980_s1, 256, %s1792_s22, [#allocation3], %s1663_s19, %s1663_s19, %s1664_s26  }
  0x3b   : > { %s1665_s16 = smov [#allocation7]   ;;  %s1666_s30 = smov [#allocation10]  }
  0x3c   : > { %s335_s25 = sshll.u32 %s1665_s16, 4  ;;  %s359_s12 = sshll.u32 %s1666_s30, 4  ;;  %s336_s25 = int_to_ptr.vmem [resolvable:$true] %s335_s25  ;;  %s360_s12 = int_to_ptr.vmem [resolvable:$true] %s359_s12 }
  0x3d   : > { %s1515_s2 = scalar_lea.vmem %s336_s25, 16  ;;  %s1522_s6 = scalar_lea.vmem %s336_s25, 32 }
  0x3e   : > { %p1516_p10 = scmp.ne.s32.totalorder %s336_s25, %s1515_s2  ;;  %p1523_p0 = scmp.lt.s32.totalorder %s336_s25, %s336_s25 }
  0x3f   : > { %p1524_p1 = scmp.lt.s32.totalorder %s1522_s6, %s1515_s2 }
  0x40   : > { %p1518_p8 = pnand %p1516_p10, %p1796_p13 }
  0x41   : > { %p1525_p2 = por %p1524_p1, %p1523_p0 }
  0x42   : > { %p1519_p11 = pneg %p1518_p8 }
  0x44   : > { %p1526_p9 = pnand %p1525_p2, %p1519_p11 }
  0x46   : > { %1529 = shalt.err (!%p1526_p9)
}
  0x47   : > { %1357 = dma.hbm_to_vmem [thread:$0]  (!%p1788_p12), %s1983_s4, 16, %s336_s25, [#allocation6]  }
  0x48   : > { %s1541_s13 = scalar_lea.vmem %s360_s12, 512  ;;  %p1549_p5 = scmp.lt.s32.totalorder %s360_s12, %s360_s12 }
  0x49   : > { %p1542_p3 = scmp.ne.s32.totalorder %s360_s12, %s1541_s13  ;;  %p1550_p6 = scmp.lt.s32.totalorder %s1541_s13, %s1541_s13 }
  0x4b   : > { %p1544_p4 = pnand %p1542_p3, %p1796_p13  ;;  %p1551_p10 = por %p1550_p6, %p1549_p5 }
  0x4d   : > { %p1545_p7 = pneg %p1544_p4 }
  0x4f   : > { %p1552_p8 = pnand %p1551_p10, %p1545_p7 }
  0x51   : > { %1555 = shalt.err (!%p1552_p8)
}
  0x52   : > { %1363 = dma.hbm_to_vmem [thread:$0]  (!%p1788_p12), %s1986_s7, 512, %s360_s12, [#allocation9], %s1663_s19, %s1663_s19, %s1664_s26  }
  0x53   : > { %s1667_s16 = smov [#allocation11]  }
  0x54   : > { %s373_s25 = sshll.u32 %s1667_s16, 4  ;;  %s374_s25 = int_to_ptr.vmem [resolvable:$true] %s373_s25 }
  0x55   : > { %s1567_s30 = scalar_lea.vmem %s374_s25, 16  ;;  %s1574_s14 = scalar_lea.vmem %s374_s25, 32 }
  0x56   : > { %p1568_p11 = scmp.ne.s32.totalorder %s374_s25, %s1567_s30  ;;  %p1575_p2 = scmp.lt.s32.totalorder %s374_s25, %s374_s25 }
  0x57   : > { %p1576_p9 = scmp.lt.s32.totalorder %s1574_s14, %s1567_s30 }
  0x58   : > { %p1570_p0 = pnand %p1568_p11, %p1796_p13 }
  0x59   : > { %p1577_p3 = por %p1576_p9, %p1575_p2 }
  0x5a   : > { %p1571_p1 = pneg %p1570_p0 }
  0x5c   : > { %p1578_p4 = pnand %p1577_p3, %p1571_p1 }
  0x5e   : > { %1581 = shalt.err (!%p1578_p4)
}
  0x5f   : > { %1366 = dma.hbm_to_vmem [thread:$0]  (!%p1788_p12), %s1987_s8, 16, %s374_s25, [#allocation12]  }
  0x60   : > { %p2006_p7 = scmp.ne.s32.totalorder %s2001_s29, 0 }
  0x61   : > { %p2007_p5 = scmp.eq.s32.totalorder (!%p2006_p7), %s1752_s21, 0 }
  0x62   : > { %401 = sbr.rel (%p2006_p7) target bundleno = 1136 (0x470), region = 64 }
  0x67   : > { %1625 = dma.done.wait (%p2007_p5), [#allocation3], 256   ;;  %p2008_p13 = pmov %p2007_p5 }
  0x68   : > { %p2009_p6 = pmov %p2007_p5 }
  0x69   : > { %1627 = vsyncadd (%p2008_p13), [#allocation3], 4294967040 }
  0x6a   : > { %1629 = dma.done.wait (%p2009_p6), [#allocation6], 32   ;;  %p2010_p10 = pmov %p2007_p5 }
  0x6b   : > { %p2011_p8 = pmov %p2007_p5 }
  0x6c   : > { %1631 = vsyncadd (%p2010_p10), [#allocation6], 4294967264 }
  0x6d   : > { %1633 = dma.done.wait (%p2011_p8), [#allocation9], 528   ;;  %p2012_p12 = pmov %p2007_p5 }
  0x6e   : > { %p2013_p11 = pmov %p2007_p5 }
  0x6f   : > { %1635 = vsyncadd (%p2012_p12), [#allocation9], 4294966768 }
  0x70   : > { %1637 = dma.done.wait (%p2013_p11), [#allocation12], 16   ;;  %p2014_p0 = pmov %p2007_p5 }
  0x71   : > { %s1185_s29 = sshll.u32 %s1752_s21, 2  ;;  %vm481_vm0 = vcmask 130048   ;;  %v473_v0 = vld [vmem:[#allocation2 + $0x8] sm:$0xff]  ;;  %v472_v1 = vld [vmem:[#allocation2] sm:$0xff]  ;;  %v586_v6 = vld [vmem:[%s1982_s3 + $0x18] sm:$0xff]  ;;  %vm594_vm1 = vcmask 261120  }
  0x72   : > { %1639 = vsyncadd (%p2014_p0), [#allocation12], 4294967280  ;;  %p462_p1 = scmp.lt.s32.totalorder %s1185_s29, 7  ;;  %1256 = vmatprep.subr.mxu0 %v473_v0  ;;  %1266 = vmatprep.subr.mxu1 %v586_v6  ;;  %v585_v7 = vld [vmem:[%s1982_s3 + $0x10] sm:$0xff]  ;;  %v584_v8 = vld [vmem:[%s1982_s3 + $0x8] sm:$0xff]  ;;  %s1217_s6 = sshll.u32 %s1752_s21, 9 }
  0x73   : > { %1257 = vmatpush3.msra.mxu0 %v473_v0  ;;  %1267 = vmatpush3.msra.mxu1 %v586_v6  ;;  %v583_v9 = vld [vmem:[%s1982_s3] sm:$0xff]  ;;  %v699_v10 = vld [vmem:[%s1984_s5 + $0x18] sm:$0xff]  ;;  %v1187_v11 = vld [vmem:[#allocation5] ss:$0 sm:$0xff]  ;;  %s1937_s30 = scalar_lea.hbm %s1990_s11, %s1217_s6  ;;  %p2015_p9 = scmp.ne.s32.totalorder %s1999_s27, 0 }
  0x74   : > { %s2023_s29 = smov (!%p462_p1, %s1185_s29), 7  ;;  %1258 = vmatprep.subr.mxu0 %v472_v1  ;;  %1268 = vmatprep.subr.mxu1 %v585_v7  ;;  %v698_v24 = vld [vmem:[%s1984_s5 + $0x10] sm:$0xff]  ;;  %v697_v25 = vld [vmem:[%s1984_s5 + $0x8] sm:$0xff]  ;;  %v696_v26 = vld [vmem:[%s1984_s5] sm:$0xff]  ;;  %s1668_s22 = smov [#allocation13]  }
  0x75   : > { %s1186_s15 = sshll.u32 %s2023_s29, 3  ;;  %1259 = vmatpush3.msra.mxu0 %v472_v1  ;;  %1269 = vmatpush3.msra.mxu1 %v585_v7  ;;  %v811_v27 = vld [vmem:[#allocation10 + $0x18] sm:$0xff]  ;;  %v810_v41 = vld [vmem:[#allocation10 + $0x10] sm:$0xff]  ;;  %v809_v42 = vld [vmem:[#allocation10 + $0x8] sm:$0xff]  ;;  %s1586_s13 = sshll.u32 %s1668_s22, 4  ;;  %s1587_s13 = int_to_ptr.vmem [resolvable:$false] %s1586_s13 }
  0x76   : > { %s465_s26 = scalar_lea.vmem %s1979_s0, %s1186_s15  ;;  %1270 = vmatprep.subr.mxu1 %v584_v8  ;;  %1280 = vmatprep.subr.mxu0 %v699_v10  ;;  %v1192_v28 = vld [vmem:[#allocation7] ss:$0 sm:$0xff]  ;;  %v808_v43 = vld [vmem:[#allocation10] sm:$0xff]  ;;  %v1197_v45 = vld [vmem:[#allocation8] ss:$0 sm:$0xff]  ;;  %s458_s15 = sand.u32 1, %s1650_s18  }
  0x77   : > { %v468_v2 = vld [vmem:[%s465_s26] sm:$0xff]  ;;  %v469_v3 = vld [vmem:[%s465_s26 + $0x8] sm:$0xff]  ;;  %v470_v4 = vld [vmem:[%s465_s26 + $0x10] sm:$0xff]  ;;  %1271 = vmatpush3.msra.mxu1 %v584_v8  ;;  %s1184_s24 = sshll.u32 %s458_s15, 5  ;;  %s1939_s14 = scalar_lea.sflag [#allocation4], %s458_s15 }
  0x78   : > { %1260 = vmatprep.mubr.msk.f32.mxu0 %vm481_vm0, %v468_v2  ;;  %v471_v5 = vld [vmem:[%s465_s26 + $0x18] sm:$0xff]  ;;  %1272 = vmatprep.subr.mxu1 %v583_v9  ;;  %v922_v58 = vld [vmem:[%s1988_s9 + $0x10] sm:$0xff]  ;;  %v921_v59 = vld [vmem:[%s1988_s9 + $0x8] sm:$0xff]  ;;  %s460_s12 = scalar_lea.vmem [#allocation13], %s1184_s24  ;;  %s1588_s29 = scalar_lea.vmem %s1587_s13, 1024 }
  0x79   : > { %1261 = vmatmul.mubr.msk.f32.vlgmr.msra.gmra.mxu0 %vm481_vm0, %v469_v3  ;;  %1273 = vmatpush3.msra.mxu1 %v583_v9  ;;  %v923_v44 = vld [vmem:[%s1988_s9 + $0x18] sm:$0xff]  ;;  %v920_v60 = vld [vmem:[%s1988_s9] sm:$0xff]  ;;  %v1202_v61 = vld [vmem:[#allocation11] ss:$0 sm:$0xff]  ;;  %s1046_s2 = sshll.u32 %s460_s12, 4  ;;  %s1932_s2 = int_to_ptr.vmem [resolvable:$true] %s1046_s2 }
  0x7a   : > { %1263 = vmatprep.mubr.msk.f32.mxu0 %vm481_vm0, %v470_v4  ;;  %1281 = vmatpush3.msra.mxu0 %v699_v10  ;;  %v1207_v10 = vld [vmem:[%s1989_s10] ss:$0 sm:$0xff]  ;;  %s1582_s21 = scalar_lea.vmem %s1932_s2, 512  ;;  %p1589_p7 = scmp.lt.s32.totalorder %s1932_s2, %s1587_s13 }
  0x7b   : > { %1282 = vmatprep.subr.mxu0 %v698_v24  ;;  %1294 = vmatprep.subr.mxu1 %v811_v27  ;;  %p1583_p2 = scmp.ne.s32.totalorder %s1932_s2, %s1582_s21  ;;  %p1590_p5 = scmp.lt.s32.totalorder %s1588_s29, %s1582_s21 }
  0x7c   : > { %1283 = vmatpush3.msra.mxu0 %v698_v24 }
  0x7d   : > { %1264 = vmatmul.mubr.msk.f32.gmra.mxu0 %vm481_vm0, %v471_v5  ;;  %1284 = vmatprep.subr.mxu0 %v697_v25  ;;  %p1584_p3 = pnand %p1583_p2, %p2015_p9  ;;  %p1591_p13 = por %p1590_p5, %p1589_p7 }
  0x7e   : > { %1285 = vmatpush3.msra.mxu0 %v697_v25 }
  0x7f   : > { %1286 = vmatprep.subr.mxu0 %v696_v26  ;;  %p1585_p4 = pneg %p1584_p3 }
  0x80   : > { %1287 = vmatpush3.msra.mxu0 %v696_v26 }
  0x81   : > { %1308 = vmatprep.subr.mxu0 %v923_v44  ;;  %p1592_p6 = pnand %p1591_p13, %p1585_p4 }
 0x139   : > { %v1262_v12 = vpop.f32.mrf.mxu0 }
 0x13a   : > { %v566_v13 = vadd.f32 %v1262_v12, %v1187_v11 }
 0x13b   : > { %v560_v14 = vpop.f32.mrf.mxu0 }
 0x13c   : > { %v561_v15 = vadd.f32 %v1187_v11, %v560_v14  ;;  %v580_v18 = vmax.f32 %v566_v13, 0.0 }
 0x13d   : > { %v1265_v16 = vpop.f32.mrf.mxu0 }
 0x13e   : > { %v579_v17 = vmax.f32 %v561_v15, 0.0  ;;  %v576_v19 = vadd.f32 %v1265_v16, %v1187_v11 }
 0x13f   : > { %v570_v20 = vpop.f32.mrf.mxu0 }
 0x140   : > { %v571_v21 = vadd.f32 %v1187_v11, %v570_v20  ;;  %1274 = vmatprep.mubr.msk.f32.mxu1 %vm594_vm1, %v579_v17  ;;  %v582_v23 = vmax.f32 %v576_v19, 0.0 }
 0x141   : > { %1275 = vmatmul.mubr.msk.f32.vlgmr.msra.gmra.mxu1 %vm594_vm1, %v580_v18 }
 0x142   : > { %v581_v22 = vmax.f32 %v571_v21, 0.0  ;;  %1295 = vmatpush3.msra.mxu1 %v811_v27 }
 0x143   : > { %1296 = vmatprep.subr.mxu1 %v810_v41 }
 0x144   : > { %1277 = vmatprep.mubr.msk.f32.mxu1 %vm594_vm1, %v581_v22  ;;  %1297 = vmatpush3.msra.mxu1 %v810_v41 }
 0x145   : > { %1278 = vmatmul.mubr.msk.f32.gmra.mxu1 %vm594_vm1, %v582_v23  ;;  %1298 = vmatprep.subr.mxu1 %v809_v42 }
 0x146   : > { %1299 = vmatpush3.msra.mxu1 %v809_v42 }
 0x147   : > { %1300 = vmatprep.subr.mxu1 %v808_v43 }
 0x148   : > { %1301 = vmatpush3.msra.mxu1 %v808_v43 }
 0x201   : > { %v1276_v29 = vpop.f32.mrf.mxu1 }
 0x202   : > { %v679_v30 = vadd.f32 %v1276_v29, %v1192_v28 }
 0x203   : > { %v673_v31 = vpop.f32.mrf.mxu1 }
 0x204   : > { %v674_v32 = vadd.f32 %v1192_v28, %v673_v31  ;;  %v693_v35 = vmax.f32 %v679_v30, 0.0 }
 0x205   : > { %v1279_v33 = vpop.f32.mrf.mxu1 }
 0x206   : > { %v692_v34 = vmax.f32 %v674_v32, 0.0  ;;  %v689_v36 = vadd.f32 %v1279_v33, %v1192_v28 }
 0x207   : > { %v683_v37 = vpop.f32.mrf.mxu1 }
 0x208   : > { %v684_v38 = vadd.f32 %v1192_v28, %v683_v37  ;;  %1288 = vmatprep.mubr.msk.f32.mxu0 %vm594_vm1, %v692_v34  ;;  %v695_v40 = vmax.f32 %v689_v36, 0.0 }
 0x209   : > { %1289 = vmatmul.mubr.msk.f32.vlgmr.msra.gmra.mxu0 %vm594_vm1, %v693_v35 }
 0x20a   : > { %v694_v39 = vmax.f32 %v684_v38, 0.0  ;;  %1309 = vmatpush3.msra.mxu0 %v923_v44 }
 0x20b   : > { %1310 = vmatprep.subr.mxu0 %v922_v58 }
 0x20c   : > { %1291 = vmatprep.mubr.msk.f32.mxu0 %vm594_vm1, %v694_v39  ;;  %1311 = vmatpush3.msra.mxu0 %v922_v58 }
 0x20d   : > { %1292 = vmatmul.mubr.msk.f32.gmra.mxu0 %vm594_vm1, %v695_v40  ;;  %1312 = vmatprep.subr.mxu0 %v921_v59 }
 0x20e   : > { %1313 = vmatpush3.msra.mxu0 %v921_v59 }
 0x20f   : > { %1314 = vmatprep.subr.mxu0 %v920_v60 }
 0x210   : > { %1315 = vmatpush3.msra.mxu0 %v920_v60 }
 0x2c9   : > { %v1290_v46 = vpop.f32.mrf.mxu0 }
 0x2ca   : > { %v791_v47 = vadd.f32 %v1290_v46, %v1197_v45 }
 0x2cb   : > { %v785_v48 = vpop.f32.mrf.mxu0 }
 0x2cc   : > { %v786_v49 = vadd.f32 %v1197_v45, %v785_v48  ;;  %v805_v52 = vmax.f32 %v791_v47, 0.0 }
 0x2cd   : > { %v1293_v50 = vpop.f32.mrf.mxu0 }
 0x2ce   : > { %v804_v51 = vmax.f32 %v786_v49, 0.0  ;;  %v801_v53 = vadd.f32 %v1293_v50, %v1197_v45 }
 0x2cf   : > { %v795_v54 = vpop.f32.mrf.mxu0 }
 0x2d0   : > { %v796_v55 = vadd.f32 %v1197_v45, %v795_v54  ;;  %1302 = vmatprep.mubr.msk.f32.mxu1 %vm594_vm1, %v804_v51  ;;  %v807_v57 = vmax.f32 %v801_v53, 0.0 }
 0x2d1   : > { %1303 = vmatmul.mubr.msk.f32.vlgmr.msra.gmra.mxu1 %vm594_vm1, %v805_v52 }
 0x2d2   : > { %v806_v56 = vmax.f32 %v796_v55, 0.0 }
 0x2d4   : > { %1305 = vmatprep.mubr.msk.f32.mxu1 %vm594_vm1, %v806_v56 }
 0x2d5   : > { %1306 = vmatmul.mubr.msk.f32.gmra.mxu1 %vm594_vm1, %v807_v57 }
 0x391   : > { %v1304_v62 = vpop.f32.mrf.mxu1 }
 0x392   : > { %v903_v63 = vadd.f32 %v1304_v62, %v1202_v61 }
 0x393   : > { %v897_v0 = vpop.f32.mrf.mxu1 }
 0x394   : > { %v898_v1 = vadd.f32 %v1202_v61, %v897_v0  ;;  %v917_v4 = vmax.f32 %v903_v63, 0.0 }
 0x395   : > { %v1307_v2 = vpop.f32.mrf.mxu1 }
 0x396   : > { %v916_v3 = vmax.f32 %v898_v1, 0.0  ;;  %v913_v5 = vadd.f32 %v1307_v2, %v1202_v61 }
 0x397   : > { %v907_v6 = vpop.f32.mrf.mxu1 }
 0x398   : > { %v908_v7 = vadd.f32 %v1202_v61, %v907_v6  ;;  %1316 = vmatprep.mubr.msk.f32.mxu0 %vm594_vm1, %v916_v3  ;;  %v919_v9 = vmax.f32 %v913_v5, 0.0 }
 0x399   : > { %1317 = vmatmul.mubr.msk.f32.vlgmr.msra.gmra.mxu0 %vm594_vm1, %v917_v4 }
 0x39a   : > { %v918_v8 = vmax.f32 %v908_v7, 0.0 }
 0x39c   : > { %1319 = vmatprep.mubr.msk.f32.mxu0 %vm594_vm1, %v918_v8 }
 0x39d   : > { %1320 = vmatmul.mubr.msk.f32.gmra.mxu0 %vm594_vm1, %v919_v9 }
 0x459   : > { %v1318_v11 = vpop.f32.mrf.mxu0 }
 0x45a   : > { %v1015_v12 = vadd.f32 %v1318_v11, %v1207_v10 }
 0x45b   : > { %v1009_v13 = vpop.f32.mrf.mxu0 }
 0x45c   : > { %1029 = vst [vmem:[%s460_s12 + $0x8] sm:$0xff] %v1015_v12  ;;  %v1010_v14 = vadd.f32 %v1207_v10, %v1009_v13 }
 0x45d   : > { %v1321_v15 = vpop.f32.mrf.mxu0 }
 0x45e   : > { %1028 = vst [vmem:[%s460_s12] sm:$0xff] %v1010_v14  ;;  %v1025_v16 = vadd.f32 %v1321_v15, %v1207_v10 }
 0x45f   : > { %v1019_v17 = vpop.f32.mrf.mxu0 }
 0x460   : > { %1031 = vst [vmem:[%s460_s12 + $0x18] sm:$0xff] %v1025_v16  ;;  %v1020_v18 = vadd.f32 %v1207_v10, %v1019_v17 }
 0x462   : > { %1030 = vst [vmem:[%s460_s12 + $0x10] sm:$0xff] %v1020_v18 }
 0x463   : > { %1595 = shalt.err (!%p1592_p6)
}
 0x464   : > { %s1596_s15 = scalar_lea.hbm %s1937_s30, 512  ;;  %s1600_s26 = scalar_lea.hbm %s1990_s11, 1024 }
 0x465   : > { %p1597_p10 = scmp.ne.s32.totalorder %s1937_s30, %s1596_s15  ;;  %p1601_p11 = scmp.lt.s32.totalorder %s1937_s30, %s1990_s11 }
 0x466   : > { %p1602_p0 = scmp.lt.s32.totalorder %s1600_s26, %s1596_s15 }
 0x467   : > { %p1598_p8 = pnand %p1597_p10, %p2015_p9 }
 0x468   : > { %p1603_p1 = por %p1602_p0, %p1601_p11 }
 0x469   : > { %p1599_p12 = pneg %p1598_p8 }
 0x46b   : > { %p1604_p2 = pnand %p1603_p1, %p1599_p12 }
 0x46d   : > { %1607 = shalt.err (!%p1604_p2)
}
 0x46e   : > { %s1669_s16 = smov 128   ;;  %s1670_s25 = smov 8  }
 0x46f   : > { %1346 = dma.vmem_to_hbm [thread:$0]  (%p2015_p9), %s1932_s2, 512, %s1937_s30, %s1939_s14, %s1669_s16, %s1669_s16, %s1670_s25  }
 0x470 PF: > { %p1383_p3 = scmp.ge.s32.totalorder %s1658_s20, 2  ;;  %s1061_s21 = sand.u32 1, %s1646_s17  }
 0x471   : > { %p2016_p4 = scmp.ne.s32.totalorder %s2000_s28, 0  ;;  %s1062_s22 = scalar_lea.sflag [#allocation4], %s1061_s21 }
 0x473   : > { %p1368_p7 = pnand %p1383_p3, %p2016_p4 }
 0x475   : > { %p1369_p5 = pneg %p1368_p7 }
 0x477   : > { %1641 = dma.done.wait (%p1369_p5), %s1062_s22, 512  }
 0x478   : > { %1643 = vsyncadd (%p1369_p5), %s1062_s22, 4294966784  ;;  %s2017_s13 = sld [smem:[#allocation19_spill]]  ;;  %p25_p13 = scmp.ge.s32.totalorder %s1756_s23, 4  }
 0x479   : > { %s2018_s19 = sld [smem:[#allocation20_spill]]  ;;  %s2019_s17 = smov %s1650_s18 }
 0x47a   : > { %s2021_s20 = smov %s1756_s23  ;;  %27 = sbr.rel (!%p25_p13) target bundleno = 10 (0xa), region = 124 }
 0x47e   : > { %s2020_s18 = smov %s2017_s13 }
 0x47f   :  { %1067 = vsyncpa [#allocation3], 1 }
 0x480   :  { %1069 = vsyncpa [#allocation3 + $0x1], 1 }
 0x481   :  { %1070 = vsyncpa [#allocation6], 1 }
 0x482   :  { %1071 = vsyncpa [#allocation9], 1 }
 0x483   :  { %1072 = vsyncpa [#allocation12], 1 }
 0x484   :  { %1073 = vsyncpa [#allocation4], 1 }
 0x485   :  { %1075 = vsyncpa [#allocation4 + $0x1], 1 }

</bundles_post_ra>
